<compile_context>
chip_gen: v7x
topology: tpu7x:2x2x1
jax: 0.10.0
libtpu: 0.0.40
codegen_flags: <defaults>
</compile_context>

<pallas_src>
import jax
import jax.numpy as jnp
from jax.experimental import pallas as pl
from jax.experimental.pallas import tpu as pltpu


# ----------------------------------------------------------------------------
# Shared LSTM recurrence body (image projection + hoisted input projection).
# ----------------------------------------------------------------------------
def _lstm_recurrence(img_ref, emb_ref, wimg_ref, bimg_ref,
                     wih_ref, whh_ref, blstm_ref,
                     gates_ref, hs_ref):
    """Runs the LSTM over T steps; writes hidden states into hs_ref (T,B,H) f32.

    img_ref  : (B, F)          bf16 image features
    emb_ref  : ((T-1)*B, H)    bf16 token embeddings, time-major flattened
    wimg_ref : (F, H) bf16 ;  bimg_ref : (1, H) f32
    wih_ref  : (H, 4H) bf16 ; whh_ref : (H, 4H) bf16 ; blstm_ref : (1, 4H) f32
    gates_ref: (T*B, 4H) f32   VMEM scratch holding the hoisted input projection
    hs_ref   : (T, B, H) f32   destination for hidden states (output or scratch)
    """
    T, B, H = hs_ref.shape

    # Image projection: (B, H) f32 accumulation of a bf16 matmul.
    img_emb = (jnp.dot(img_ref[...], wimg_ref[...],
                       preferred_element_type=jnp.float32)
               + bimg_ref[...])

    wih = wih_ref[...]     # bf16
    whh = whh_ref[...]     # bf16

    # Hoisted input projection: one (B,4H) matmul for the image step + one
    # ((T-1)*B,4H) matmul for all text steps, parked in VMEM scratch so the
    # serial time loop only touches ref views (zero cost, bounded vreg use).
    gates_ref[pl.ds(0, B), :] = jnp.dot(
        img_emb.astype(jnp.bfloat16), wih, preferred_element_type=jnp.float32)
    gates_ref[pl.ds(B, (T - 1) * B), :] = jnp.dot(
        emb_ref[...], wih, preferred_element_type=jnp.float32)

    # Hoisted bias broadcast (JAX does not CSE broadcast_in_dim inside loops).
    blstm_b = jnp.broadcast_to(blstm_ref[...], (B, 4 * H))

    def step(t, carry):
        h, c = carry
        row = pl.multiple_of(t * B, B)
        g_x = gates_ref[pl.ds(row, B), :]                       # (B, 4H) view
        gates = (g_x
                 + jnp.dot(h.astype(jnp.bfloat16), whh,
                           preferred_element_type=jnp.float32)
                 + blstm_b)
        # H is a multiple of 128 -> each gate slice is a whole lane-tile block.
        i_g = jax.nn.sigmoid(gates[:, 0 * H:1 * H])
        f_g = jax.nn.sigmoid(gates[:, 1 * H:2 * H])
        g_g = jnp.tanh(gates[:, 2 * H:3 * H])
        o_g = jax.nn.sigmoid(gates[:, 3 * H:4 * H])
        c = f_g * c + i_g * g_g
        h = o_g * jnp.tanh(c)
        hs_ref[t] = h                                            # full (B,H) tile store
        return (h, c)

    h0 = jnp.zeros((B, H), jnp.float32)
    c0 = jnp.zeros((B, H), jnp.float32)
    # TODO(synk): for very large T switch unroll=True to a fixed factor.
    jax.lax.fori_loop(0, T, step, (h0, c0), unroll=True)


# ----------------------------------------------------------------------------
# Kernels
# ----------------------------------------------------------------------------
def lstm_recurrence_kernel(img_ref, emb_ref, wimg_ref, bimg_ref,
                           wih_ref, whh_ref, blstm_ref,
                           h_out_ref, gates_ref):
    """Split path, kernel 1: recurrence only. h_out_ref: (T, B, H) f32."""
    _lstm_recurrence(img_ref, emb_ref, wimg_ref, bimg_ref,
                     wih_ref, whh_ref, blstm_ref, gates_ref, h_out_ref)


def fused_caption_kernel(img_ref, emb_ref, wimg_ref, bimg_ref,
                         wih_ref, whh_ref, blstm_ref,
                         wfc_ref, bfc_ref,
                         out_ref, gates_ref, hs_ref):
    """Fused path (small V): recurrence + fc epilogue in one dispatch.

    out_ref: (T*B, V_pad) f32, time-major rows (row = t*B + b)."""
    T, B, H = hs_ref.shape
    _lstm_recurrence(img_ref, emb_ref, wimg_ref, bimg_ref,
                     wih_ref, whh_ref, blstm_ref, gates_ref, hs_ref)
    hs = hs_ref[...].reshape(T * B, H).astype(jnp.bfloat16)
    out_ref[...] = (jnp.dot(hs, wfc_ref[...],
                            preferred_element_type=jnp.float32)
                    + bfc_ref[...])


def fc_kernel(h_ref, wfc_ref, bfc_ref, out_ref):
    """Split path, kernel 2: one vocab tile of the output projection.

    h_ref   : (B*T, H)  bf16 batch-major hidden states (grid-invariant block)
    wfc_ref : (H, TV)   bf16 vocab tile ;  bfc_ref : (1, TV) f32
    out_ref : (B*T, TV) f32 lane-dense logits tile (batch-major rows)
    """
    out_ref[...] = (jnp.dot(h_ref[...], wfc_ref[...],
                            preferred_element_type=jnp.float32)
                    + bfc_ref[...])


# ----------------------------------------------------------------------------
# Tiling / path selection
# ----------------------------------------------------------------------------
def _pick_vocab_tile(v_pad, rows, h, budget_bytes=24 * 1024 * 1024):
    """Largest 128-multiple vocab tile fitting a VMEM budget; prefers a grid of
    >= 8 tiles (pipelining depth + v7x two-TensorCore split)."""
    def fits(tv):
        need = (2 * h * tv * 2          # double-buffered bf16 weight tiles
                + 2 * rows * tv * 4     # double-buffered f32 output tiles
                + 2 * tv * 4            # bias tiles
                + rows * h * 2)         # resident bf16 hidden block
        return need <= budget_bytes

    cands = [tv for tv in (1024, 512, 256, 128) if v_pad % tv == 0 and fits(tv)]
    if not cands:
        return 128
    deep = [tv for tv in cands if v_pad // tv >= 8]
    return deep[0] if deep else cands[0]


def _fused_fits(B, F, T, H, v_pad, budget_bytes=12 * 1024 * 1024):
    """Everything (weights + activations + logits) fits comfortably in VMEM ->
    run as a single fused pallas_call (dispatch/latency-bound regime)."""
    need = (B * F * 2 + (T - 1) * B * H * 2                    # bf16 inputs
            + F * H * 2 + 2 * H * 4 * H * 2 + H * v_pad * 2    # bf16 weights
            + (H + 4 * H + v_pad) * 4                          # f32 biases
            + T * B * 4 * H * 4 + T * B * H * 4                # f32 scratch
            + T * B * v_pad * 4)                               # f32 logits
    return 2 * need <= budget_bytes                            # 2x buffering headroom


# ----------------------------------------------------------------------------
# Wrapper
# ----------------------------------------------------------------------------
def captioning_forward(image_feat, input_ids, params, force_split=False):
    """Forward pass of CaptioningModel via Pallas TPU kernels."""
    B, F = image_feat.shape
    T = input_ids.shape[1]                    # LSTM seq len = 1 + (T_ids - 1)
    H = params["w_img"].shape[1]
    V = params["w_fc"].shape[1]
    V_pad = ((V + 127) // 128) * 128          # pad vocab to a lane multiple

    bf16, f32 = jnp.bfloat16, jnp.float32

    # bf16 matmul operands (explicit choice; f32 accumulation inside kernels).
    img_bf = image_feat.astype(bf16)
    w_img = params["w_img"].astype(bf16)
    w_ih = params["w_ih"].astype(bf16)
    w_hh = params["w_hh"].astype(bf16)
    emb_tbl = params["embedding"].astype(bf16)
    b_img = params["b_img"].astype(f32)
    b_lstm = params["b_lstm"].astype(f32)

    w_fc = params["w_fc"]
    b_fc = params["b_fc"]
    if V_pad != V:
        w_fc = jnp.pad(w_fc, ((0, 0), (0, V_pad - V)))
        b_fc = jnp.pad(b_fc, ((0, 0), (0, V_pad - V)))
    w_fc = w_fc.astype(bf16)
    b_fc = b_fc.astype(f32)

    # Embedding lookup (data-dependent gather) stays in JAX glue; time-major
    # flatten so each step reads a contiguous, sublane-aligned (B,4H) slab of
    # the precomputed input projection.
    text_emb = jnp.take(emb_tbl, input_ids[:, :-1], axis=0)          # (B, T-1, H)
    text_emb_tm = jnp.transpose(text_emb, (1, 0, 2)).reshape((T - 1) * B, H)

    def full(shape):
        return pl.BlockSpec(shape, lambda i, _n=len(shape): (0,) * _n)

    rec_in_specs = [
        full((B, F)),                 # image features
        full(((T - 1) * B, H)),       # token embeddings (time-major, flat)
        full((F, H)), full((1, H)),   # w_img, b_img
        full((H, 4 * H)),             # w_ih
        full((H, 4 * H)),             # w_hh
        full((1, 4 * H)),             # b_lstm (b_ih + b_hh)
    ]
    gates_scratch = pltpu.VMEM((T * B, 4 * H), f32)

    if (not force_split) and _fused_fits(B, F, T, H, V_pad):
        # --- single fused dispatch: recurrence + fc epilogue -----------------
        logits_tm = pl.pallas_call(
            fused_caption_kernel,
            out_shape=jax.ShapeDtypeStruct((T * B, V_pad), f32),
            grid=(1,),
            in_specs=rec_in_specs + [full((H, V_pad)), full((1, V_pad))],
            out_specs=full((T * B, V_pad)),
            scratch_shapes=[gates_scratch, pltpu.VMEM((T, B, H), f32)],
            compiler_params=pltpu.CompilerParams(
                dimension_semantics=("arbitrary",),
                vmem_limit_bytes=32 * 1024 * 1024),
        )(img_bf, text_emb_tm, w_img, b_img, w_ih, w_hh, b_lstm, w_fc, b_fc)
        # Tiny at fused sizes; the split path avoids the logits-sized transpose.
        logits = jnp.transpose(logits_tm.reshape(T, B, V_pad), (1, 0, 2))
    else:
        # --- kernel 1: recurrence --------------------------------------------
        h_seq = pl.pallas_call(
            lstm_recurrence_kernel,
            out_shape=jax.ShapeDtypeStruct((T, B, H), f32),
            grid=(1,),
            in_specs=rec_in_specs,
            out_specs=full((T, B, H)),
            scratch_shapes=[gates_scratch],
            compiler_params=pltpu.CompilerParams(
                dimension_semantics=("arbitrary",),
                vmem_limit_bytes=32 * 1024 * 1024),
        )(img_bf, text_emb_tm, w_img, b_img, w_ih, w_hh, b_lstm)

        # Transpose the *small* (T,B,H) tensor to batch-major so the fc kernel
        # writes (B*T, V) directly — no logits-sized transpose afterwards.
        hs_bm = jnp.transpose(h_seq, (1, 0, 2)).reshape(B * T, H).astype(bf16)

        # --- kernel 2: vocab-tiled output projection --------------------------
        TV = _pick_vocab_tile(V_pad, B * T, H)
        logits_bm = pl.pallas_call(
            fc_kernel,
            out_shape=jax.ShapeDtypeStruct((B * T, V_pad), f32),
            grid=(pl.cdiv(V_pad, TV),),
            in_specs=[
                pl.BlockSpec((B * T, H), lambda j: (0, 0)),
                pl.BlockSpec((H, TV), lambda j: (0, j)),
                pl.BlockSpec((1, TV), lambda j: (0, j)),
            ],
            out_specs=pl.BlockSpec((B * T, TV), lambda j: (0, j)),
            compiler_params=pltpu.CompilerParams(
                dimension_semantics=("parallel",),
                vmem_limit_bytes=32 * 1024 * 1024),
        )(hs_bm, w_fc, b_fc)
        logits = logits_bm.reshape(B, T, V_pad)

    return logits[..., :V] if V_pad != V else logits


# ----------------------------------------------------------------------------
# Parameters / reference
# ----------------------------------------------------------------------------
def init_params(key, feature_dim, hidden_dim, vocab_size):
    """Deterministic synthetic parameters (shapes match the PyTorch module)."""
    ks = jax.random.split(key, 8)
    scale = 0.05
    return {
        # nn.Linear(feature_dim, hidden_dim) -> stored transposed as (F, H)
        "w_img": scale * jax.random.normal(ks[0], (feature_dim, hidden_dim), jnp.float32),
        "b_img": scale * jax.random.normal(ks[1], (1, hidden_dim), jnp.float32),
        # nn.Embedding(vocab_size, hidden_dim)
        "embedding": scale * jax.random.normal(ks[2], (vocab_size, hidden_dim), jnp.float32),
        # nn.LSTM(hidden_dim, hidden_dim): weight_ih (4H,H), weight_hh (4H,H) -> transposed
        "w_ih": scale * jax.random.normal(ks[3], (hidden_dim, 4 * hidden_dim), jnp.float32),
        "w_hh": scale * jax.random.normal(ks[4], (hidden_dim, 4 * hidden_dim), jnp.float32),
        # b_ih + b_hh folded into one bias
        "b_lstm": scale * jax.random.normal(ks[5], (1, 4 * hidden_dim), jnp.float32),
        # nn.Linear(hidden_dim, vocab_size) -> transposed as (H, V)
        "w_fc": scale * jax.random.normal(ks[6], (hidden_dim, vocab_size), jnp.float32),
        "b_fc": scale * jax.random.normal(ks[7], (1, vocab_size), jnp.float32),
    }


def reference_forward(image_feat, input_ids, params):
    """Pure-JAX f32 (HIGHEST precision) reference of the PyTorch forward."""
    prec = jax.lax.Precision.HIGHEST
    B = image_feat.shape[0]
    H = params["w_img"].shape[1]
    img_emb = jnp.dot(image_feat, params["w_img"], precision=prec) + params["b_img"]
    text_emb = jnp.take(params["embedding"], input_ids[:, :-1], axis=0)
    seq = jnp.concatenate([img_emb[:, None, :], text_emb], axis=1)       # (B, T, H)
    T = seq.shape[1]
    h = jnp.zeros((B, H), jnp.float32)
    c = jnp.zeros((B, H), jnp.float32)
    outs = []
    for t in range(T):
        gates = (jnp.dot(seq[:, t, :], params["w_ih"], precision=prec)
                 + jnp.dot(h, params["w_hh"], precision=prec)
                 + params["b_lstm"])
        i_g = jax.nn.sigmoid(gates[:, 0 * H:1 * H])
        f_g = jax.nn.sigmoid(gates[:, 1 * H:2 * H])
        g_g = jnp.tanh(gates[:, 2 * H:3 * H])
        o_g = jax.nn.sigmoid(gates[:, 3 * H:4 * H])
        c = f_g * c + i_g * g_g
        h = o_g * jnp.tanh(c)
        outs.append(h)
    hs = jnp.stack(outs, axis=1)                                         # (B, T, H)
    return jnp.dot(hs, params["w_fc"], precision=prec) + params["b_fc"]


if __name__ == "__main__":
    # (8,128)-aligned small shapes (B rides sublanes, H/V ride lanes).
    B = 8              # batch
    FEATURE_DIM = 64   # image feature dim
    HIDDEN_DIM = 128   # LSTM hidden dim (multiple of 128 -> aligned gate slices)
    T_IDS = 8          # caption token length (seq into LSTM = 1 + (T_IDS-1) = 8)

    key = jax.random.PRNGKey(0)
    kp1, kf, ki1, kp2, ki2 = jax.random.split(key, 5)

    # --- Case 1: 128-multiple vocab -> fused single-kernel path -------------
    V1 = 512
    params1 = init_params(kp1, FEATURE_DIM, HIDDEN_DIM, V1)
    image_feat = jax.random.normal(kf, (B, FEATURE_DIM), jnp.float32)
    input_ids1 = jax.random.randint(ki1, (B, T_IDS), 0, V1, dtype=jnp.int32)

    logits1 = captioning_forward(image_feat, input_ids1, params1)
    jax.block_until_ready(logits1)
    assert logits1.shape == (B, T_IDS, V1), logits1.shape
    assert logits1.dtype == jnp.float32
    ref1 = reference_forward(image_feat, input_ids1, params1)
    err1 = float(jnp.max(jnp.abs(logits1 - ref1)))
    assert err1 < 2e-2, f"fused path max abs error vs reference: {err1}"

    # --- Case 2: non-128-multiple vocab, forced split path ------------------
    # Exercises vocab padding + the vocab-tiled fc kernel (batch-major output).
    V2 = 520
    params2 = init_params(kp2, FEATURE_DIM, HIDDEN_DIM, V2)
    input_ids2 = jax.random.randint(ki2, (B, T_IDS), 0, V2, dtype=jnp.int32)

    logits2 = captioning_forward(image_feat, input_ids2, params2, force_split=True)
    jax.block_until_ready(logits2)
    assert logits2.shape == (B, T_IDS, V2), logits2.shape
    ref2 = reference_forward(image_feat, input_ids2, params2)
    err2 = float(jnp.max(jnp.abs(logits2 - ref2)))
    assert err2 < 2e-2, f"split path max abs error vs reference: {err2}"

    print("KERNEL_OK")
</pallas_src>

<mosaic_0001>
module attributes {stable_mosaic.version = 11 : i64} {
  func.func @fused_caption_kernel(%arg0: i32, %arg1: memref<8x64xbf16, #tpu.memory_space<vmem>>, %arg2: memref<56x128xbf16, #tpu.memory_space<vmem>>, %arg3: memref<64x128xbf16, #tpu.memory_space<vmem>>, %arg4: memref<1x128xf32, #tpu.memory_space<vmem>>, %arg5: memref<128x512xbf16, #tpu.memory_space<vmem>>, %arg6: memref<128x512xbf16, #tpu.memory_space<vmem>>, %arg7: memref<1x512xf32, #tpu.memory_space<vmem>>, %arg8: memref<128x512xbf16, #tpu.memory_space<vmem>>, %arg9: memref<1x512xf32, #tpu.memory_space<vmem>>, %arg10: memref<64x512xf32, #tpu.memory_space<vmem>>, %arg11: memref<64x512xf32, #tpu.memory_space<vmem>>, %arg12: memref<8x8x128xf32, #tpu.memory_space<vmem>>) attributes {dimension_semantics = [#tpu.dimension_semantics<arbitrary>], iteration_bounds = array<i64: 1>, scalar_prefetch = 0 : i64, scratch_operands = 2 : i64, tpu.core_type = #tpu.core_type<tc>, window_params = [{pipeline_mode = #tpu.pipeline_mode<synchronous>, transform_indices = @transform_0, window_bounds = array<i64: 8, 64>}, {pipeline_mode = #tpu.pipeline_mode<synchronous>, transform_indices = @transform_1, window_bounds = array<i64: 56, 128>}, {pipeline_mode = #tpu.pipeline_mode<synchronous>, transform_indices = @transform_2, window_bounds = array<i64: 64, 128>}, {pipeline_mode = #tpu.pipeline_mode<synchronous>, transform_indices = @transform_3, window_bounds = array<i64: 1, 128>}, {pipeline_mode = #tpu.pipeline_mode<synchronous>, transform_indices = @transform_4, window_bounds = array<i64: 128, 512>}, {pipeline_mode = #tpu.pipeline_mode<synchronous>, transform_indices = @transform_5, window_bounds = array<i64: 128, 512>}, {pipeline_mode = #tpu.pipeline_mode<synchronous>, transform_indices = @transform_6, window_bounds = array<i64: 1, 512>}, {pipeline_mode = #tpu.pipeline_mode<synchronous>, transform_indices = @transform_7, window_bounds = array<i64: 128, 512>}, {pipeline_mode = #tpu.pipeline_mode<synchronous>, transform_indices = @transform_8, window_bounds = array<i64: 1, 512>}, {pipeline_mode = #tpu.pipeline_mode<synchronous>, transform_indices = @transform_9, window_bounds = array<i64: 64, 512>}]} {
    %c0 = arith.constant 0 : index
    %c0_0 = arith.constant 0 : index
    %0 = vector.load %arg1[%c0, %c0_0] : memref<8x64xbf16, #tpu.memory_space<vmem>>, vector<8x64xbf16>
    %c0_1 = arith.constant 0 : index
    %c0_2 = arith.constant 0 : index
    %1 = vector.load %arg3[%c0_1, %c0_2] : memref<64x128xbf16, #tpu.memory_space<vmem>>, vector<64x128xbf16>
    %cst = arith.constant dense<0.000000e+00> : vector<8x128xf32>
    %2 = tpu.matmul %0, %1, %cst {dimension_numbers = #tpu.dot_dimension_numbers<[1], [0], [0], [1], [0, 0, 1, 1], [], []>} : vector<8x64xbf16>, vector<64x128xbf16>, vector<8x128xf32> -> vector<8x128xf32>
    %c0_3 = arith.constant 0 : index
    %c0_4 = arith.constant 0 : index
    %3 = vector.load %arg4[%c0_3, %c0_4] : memref<1x128xf32, #tpu.memory_space<vmem>>, vector<1x128xf32>
    %4 = vector.broadcast %3 : vector<1x128xf32> to vector<8x128xf32>
    %5 = arith.addf %2, %4 : vector<8x128xf32>
    %c0_5 = arith.constant 0 : index
    %c0_6 = arith.constant 0 : index
    %6 = vector.load %arg5[%c0_5, %c0_6] : memref<128x512xbf16, #tpu.memory_space<vmem>>, vector<128x512xbf16>
    %c0_7 = arith.constant 0 : index
    %c0_8 = arith.constant 0 : index
    %7 = vector.load %arg6[%c0_7, %c0_8] : memref<128x512xbf16, #tpu.memory_space<vmem>>, vector<128x512xbf16>
    %8 = arith.truncf %5 : vector<8x128xf32> to vector<8x128xbf16>
    %cst_9 = arith.constant dense<0.000000e+00> : vector<8x512xf32>
    %9 = tpu.matmul %8, %6, %cst_9 {dimension_numbers = #tpu.dot_dimension_numbers<[1], [0], [0], [1], [0, 0, 1, 1], [], []>} : vector<8x128xbf16>, vector<128x512xbf16>, vector<8x512xf32> -> vector<8x512xf32>
    %c0_10 = arith.constant 0 : index
    %c0_11 = arith.constant 0 : index
    %10 = vector.load %arg11[%c0_10, %c0_11] : memref<64x512xf32, #tpu.memory_space<vmem>>, vector<8x512xf32>
    tpu.vector_store %arg11[%c0_10, %c0_11], %9 {strides = array<i32>} : memref<64x512xf32, #tpu.memory_space<vmem>>, vector<8x512xf32>,
    %c0_12 = arith.constant 0 : index
    %c0_13 = arith.constant 0 : index
    %11 = vector.load %arg2[%c0_12, %c0_13] : memref<56x128xbf16, #tpu.memory_space<vmem>>, vector<56x128xbf16>
    %cst_14 = arith.constant dense<0.000000e+00> : vector<56x512xf32>
    %12 = tpu.matmul %11, %6, %cst_14 {dimension_numbers = #tpu.dot_dimension_numbers<[1], [0], [0], [1], [0, 0, 1, 1], [], []>} : vector<56x128xbf16>, vector<128x512xbf16>, vector<56x512xf32> -> vector<56x512xf32>
    %c8 = arith.constant 8 : index
    %c0_15 = arith.constant 0 : index
    %13 = vector.load %arg11[%c8, %c0_15] : memref<64x512xf32, #tpu.memory_space<vmem>>, vector<56x512xf32>
    tpu.vector_store %arg11[%c8, %c0_15], %12 {strides = array<i32>} : memref<64x512xf32, #tpu.memory_space<vmem>>, vector<56x512xf32>,
    %c0_16 = arith.constant 0 : index
    %c0_17 = arith.constant 0 : index
    %14 = vector.load %arg7[%c0_16, %c0_17] : memref<1x512xf32, #tpu.memory_space<vmem>>, vector<1x512xf32>
    %15 = vector.shape_cast %14 : vector<1x512xf32> to vector<1x512xf32>
    %16 = vector.broadcast %15 : vector<1x512xf32> to vector<8x512xf32>
    %cst_18 = arith.constant 0.000000e+00 : f32
    %17 = vector.broadcast %cst_18 : f32 to vector<8x128xf32>
    %cst_19 = arith.constant 0.000000e+00 : f32
    %18 = vector.broadcast %cst_19 : f32 to vector<8x128xf32>
    %c0_i32 = arith.constant 0 : i32
    %c8_i32 = arith.constant 8 : i32
    %19 = arith.muli %c0_i32, %c8_i32 : i32
    %20 = tpu.assume_multiple %19, 8 : i32
    %21 = arith.index_cast %20 : i32 to index
    %c0_20 = arith.constant 0 : index
    %22 = vector.load %arg11[%21, %c0_20] : memref<64x512xf32, #tpu.memory_space<vmem>>, vector<8x512xf32>
    %23 = arith.truncf %17 : vector<8x128xf32> to vector<8x128xbf16>
    %cst_21 = arith.constant dense<0.000000e+00> : vector<8x512xf32>
    %24 = tpu.matmul %23, %7, %cst_21 {dimension_numbers = #tpu.dot_dimension_numbers<[1], [0], [0], [1], [0, 0, 1, 1], [], []>} : vector<8x128xbf16>, vector<128x512xbf16>, vector<8x512xf32> -> vector<8x512xf32>
    %25 = arith.addf %22, %24 : vector<8x512xf32>
    %26 = arith.addf %25, %16 : vector<8x512xf32>
    %27 = vector.extract_strided_slice %26 {offsets = [0, 0], sizes = [8, 128], strides = [1, 1]} : vector<8x512xf32> to vector<8x128xf32>
    %28 = arith.negf %27 : vector<8x128xf32>
    %29 = math.exp %28 : vector<8x128xf32>
    %cst_22 = arith.constant 1.000000e+00 : f32
    %30 = vector.broadcast %cst_22 : f32 to vector<8x128xf32>
    %31 = arith.addf %30, %29 : vector<8x128xf32>
    %32 = arith.divf %30, %31 : vector<8x128xf32>
    %33 = vector.extract_strided_slice %26 {offsets = [0, 128], sizes = [8, 128], strides = [1, 1]} : vector<8x512xf32> to vector<8x128xf32>
    %34 = arith.negf %33 : vector<8x128xf32>
    %35 = math.exp %34 : vector<8x128xf32>
    %cst_23 = arith.constant 1.000000e+00 : f32
    %36 = vector.broadcast %cst_23 : f32 to vector<8x128xf32>
    %37 = arith.addf %36, %35 : vector<8x128xf32>
    %38 = arith.divf %36, %37 : vector<8x128xf32>
    %39 = vector.extract_strided_slice %26 {offsets = [0, 256], sizes = [8, 128], strides = [1, 1]} : vector<8x512xf32> to vector<8x128xf32>
    %40 = math.tanh %39 : vector<8x128xf32>
    %41 = vector.extract_strided_slice %26 {offsets = [0, 384], sizes = [8, 128], strides = [1, 1]} : vector<8x512xf32> to vector<8x128xf32>
    %42 = arith.negf %41 : vector<8x128xf32>
    %43 = math.exp %42 : vector<8x128xf32>
    %cst_24 = arith.constant 1.000000e+00 : f32
    %44 = vector.broadcast %cst_24 : f32 to vector<8x128xf32>
    %45 = arith.addf %44, %43 : vector<8x128xf32>
    %46 = arith.divf %44, %45 : vector<8x128xf32>
    %47 = arith.mulf %38, %18 : vector<8x128xf32>
    %48 = arith.mulf %32, %40 : vector<8x128xf32>
    %49 = arith.addf %47, %48 : vector<8x128xf32>
    %50 = math.tanh %49 : vector<8x128xf32>
    %51 = arith.mulf %46, %50 : vector<8x128xf32>
    %52 = arith.index_cast %c0_i32 : i32 to index
    %c0_25 = arith.constant 0 : index
    %c0_26 = arith.constant 0 : index
    %53 = vector.load %arg12[%52, %c0_25, %c0_26] : memref<8x8x128xf32, #tpu.memory_space<vmem>>, vector<1x8x128xf32>
    %54 = vector.shape_cast %53 : vector<1x8x128xf32> to vector<8x128xf32>
    %55 = vector.shape_cast %51 : vector<8x128xf32> to vector<1x8x128xf32>
    tpu.vector_store %arg12[%52, %c0_25, %c0_26], %55 {strides = array<i32>} : memref<8x8x128xf32, #tpu.memory_space<vmem>>, vector<1x8x128xf32>,
    %c1_i32 = arith.constant 1 : i32
    %c8_i32_27 = arith.constant 8 : i32
    %56 = arith.muli %c1_i32, %c8_i32_27 : i32
    %57 = tpu.assume_multiple %56, 8 : i32
    %58 = arith.index_cast %57 : i32 to index
    %c0_28 = arith.constant 0 : index
    %59 = vector.load %arg11[%58, %c0_28] : memref<64x512xf32, #tpu.memory_space<vmem>>, vector<8x512xf32>
    %60 = arith.truncf %51 : vector<8x128xf32> to vector<8x128xbf16>
    %cst_29 = arith.constant dense<0.000000e+00> : vector<8x512xf32>
    %61 = tpu.matmul %60, %7, %cst_29 {dimension_numbers = #tpu.dot_dimension_numbers<[1], [0], [0], [1], [0, 0, 1, 1], [], []>} : vector<8x128xbf16>, vector<128x512xbf16>, vector<8x512xf32> -> vector<8x512xf32>
    %62 = arith.addf %59, %61 : vector<8x512xf32>
    %63 = arith.addf %62, %16 : vector<8x512xf32>
    %64 = vector.extract_strided_slice %63 {offsets = [0, 0], sizes = [8, 128], strides = [1, 1]} : vector<8x512xf32> to vector<8x128xf32>
    %65 = arith.negf %64 : vector<8x128xf32>
    %66 = math.exp %65 : vector<8x128xf32>
    %cst_30 = arith.constant 1.000000e+00 : f32
    %67 = vector.broadcast %cst_30 : f32 to vector<8x128xf32>
    %68 = arith.addf %67, %66 : vector<8x128xf32>
    %69 = arith.divf %67, %68 : vector<8x128xf32>
    %70 = vector.extract_strided_slice %63 {offsets = [0, 128], sizes = [8, 128], strides = [1, 1]} : vector<8x512xf32> to vector<8x128xf32>
    %71 = arith.negf %70 : vector<8x128xf32>
    %72 = math.exp %71 : vector<8x128xf32>
    %cst_31 = arith.constant 1.000000e+00 : f32
    %73 = vector.broadcast %cst_31 : f32 to vector<8x128xf32>
    %74 = arith.addf %73, %72 : vector<8x128xf32>
    %75 = arith.divf %73, %74 : vector<8x128xf32>
    %76 = vector.extract_strided_slice %63 {offsets = [0, 256], sizes = [8, 128], strides = [1, 1]} : vector<8x512xf32> to vector<8x128xf32>
    %77 = math.tanh %76 : vector<8x128xf32>
    %78 = vector.extract_strided_slice %63 {offsets = [0, 384], sizes = [8, 128], strides = [1, 1]} : vector<8x512xf32> to vector<8x128xf32>
    %79 = arith.negf %78 : vector<8x128xf32>
    %80 = math.exp %79 : vector<8x128xf32>
    %cst_32 = arith.constant 1.000000e+00 : f32
    %81 = vector.broadcast %cst_32 : f32 to vector<8x128xf32>
    %82 = arith.addf %81, %80 : vector<8x128xf32>
    %83 = arith.divf %81, %82 : vector<8x128xf32>
    %84 = arith.mulf %75, %49 : vector<8x128xf32>
    %85 = arith.mulf %69, %77 : vector<8x128xf32>
    %86 = arith.addf %84, %85 : vector<8x128xf32>
    %87 = math.tanh %86 : vector<8x128xf32>
    %88 = arith.mulf %83, %87 : vector<8x128xf32>
    %89 = arith.index_cast %c1_i32 : i32 to index
    %c0_33 = arith.constant 0 : index
    %c0_34 = arith.constant 0 : index
    %90 = vector.load %arg12[%89, %c0_33, %c0_34] : memref<8x8x128xf32, #tpu.memory_space<vmem>>, vector<1x8x128xf32>
    %91 = vector.shape_cast %90 : vector<1x8x128xf32> to vector<8x128xf32>
    %92 = vector.shape_cast %88 : vector<8x128xf32> to vector<1x8x128xf32>
    tpu.vector_store %arg12[%89, %c0_33, %c0_34], %92 {strides = array<i32>} : memref<8x8x128xf32, #tpu.memory_space<vmem>>, vector<1x8x128xf32>,
    %c2_i32 = arith.constant 2 : i32
    %c8_i32_35 = arith.constant 8 : i32
    %93 = arith.muli %c2_i32, %c8_i32_35 : i32
    %94 = tpu.assume_multiple %93, 8 : i32
    %95 = arith.index_cast %94 : i32 to index
    %c0_36 = arith.constant 0 : index
    %96 = vector.load %arg11[%95, %c0_36] : memref<64x512xf32, #tpu.memory_space<vmem>>, vector<8x512xf32>
    %97 = arith.truncf %88 : vector<8x128xf32> to vector<8x128xbf16>
    %cst_37 = arith.constant dense<0.000000e+00> : vector<8x512xf32>
    %98 = tpu.matmul %97, %7, %cst_37 {dimension_numbers = #tpu.dot_dimension_numbers<[1], [0], [0], [1], [0, 0, 1, 1], [], []>} : vector<8x128xbf16>, vector<128x512xbf16>, vector<8x512xf32> -> vector<8x512xf32>
    %99 = arith.addf %96, %98 : vector<8x512xf32>
    %100 = arith.addf %99, %16 : vector<8x512xf32>
    %101 = vector.extract_strided_slice %100 {offsets = [0, 0], sizes = [8, 128], strides = [1, 1]} : vector<8x512xf32> to vector<8x128xf32>
    %102 = arith.negf %101 : vector<8x128xf32>
    %103 = math.exp %102 : vector<8x128xf32>
    %cst_38 = arith.constant 1.000000e+00 : f32
    %104 = vector.broadcast %cst_38 : f32 to vector<8x128xf32>
    %105 = arith.addf %104, %103 : vector<8x128xf32>
    %106 = arith.divf %104, %105 : vector<8x128xf32>
    %107 = vector.extract_strided_slice %100 {offsets = [0, 128], sizes = [8, 128], strides = [1, 1]} : vector<8x512xf32> to vector<8x128xf32>
    %108 = arith.negf %107 : vector<8x128xf32>
    %109 = math.exp %108 : vector<8x128xf32>
    %cst_39 = arith.constant 1.000000e+00 : f32
    %110 = vector.broadcast %cst_39 : f32 to vector<8x128xf32>
    %111 = arith.addf %110, %109 : vector<8x128xf32>
    %112 = arith.divf %110, %111 : vector<8x128xf32>
    %113 = vector.extract_strided_slice %100 {offsets = [0, 256], sizes = [8, 128], strides = [1, 1]} : vector<8x512xf32> to vector<8x128xf32>
    %114 = math.tanh %113 : vector<8x128xf32>
    %115 = vector.extract_strided_slice %100 {offsets = [0, 384], sizes = [8, 128], strides = [1, 1]} : vector<8x512xf32> to vector<8x128xf32>
    %116 = arith.negf %115 : vector<8x128xf32>
    %117 = math.exp %116 : vector<8x128xf32>
    %cst_40 = arith.constant 1.000000e+00 : f32
    %118 = vector.broadcast %cst_40 : f32 to vector<8x128xf32>
    %119 = arith.addf %118, %117 : vector<8x128xf32>
    %120 = arith.divf %118, %119 : vector<8x128xf32>
    %121 = arith.mulf %112, %86 : vector<8x128xf32>
    %122 = arith.mulf %106, %114 : vector<8x128xf32>
    %123 = arith.addf %121, %122 : vector<8x128xf32>
    %124 = math.tanh %123 : vector<8x128xf32>
    %125 = arith.mulf %120, %124 : vector<8x128xf32>
    %126 = arith.index_cast %c2_i32 : i32 to index
    %c0_41 = arith.constant 0 : index
    %c0_42 = arith.constant 0 : index
    %127 = vector.load %arg12[%126, %c0_41, %c0_42] : memref<8x8x128xf32, #tpu.memory_space<vmem>>, vector<1x8x128xf32>
    %128 = vector.shape_cast %127 : vector<1x8x128xf32> to vector<8x128xf32>
    %129 = vector.shape_cast %125 : vector<8x128xf32> to vector<1x8x128xf32>
    tpu.vector_store %arg12[%126, %c0_41, %c0_42], %129 {strides = array<i32>} : memref<8x8x128xf32, #tpu.memory_space<vmem>>, vector<1x8x128xf32>,
    %c3_i32 = arith.constant 3 : i32
    %c8_i32_43 = arith.constant 8 : i32
    %130 = arith.muli %c3_i32, %c8_i32_43 : i32
    %131 = tpu.assume_multiple %130, 8 : i32
    %132 = arith.index_cast %131 : i32 to index
    %c0_44 = arith.constant 0 : index
    %133 = vector.load %arg11[%132, %c0_44] : memref<64x512xf32, #tpu.memory_space<vmem>>, vector<8x512xf32>
    %134 = arith.truncf %125 : vector<8x128xf32> to vector<8x128xbf16>
    %cst_45 = arith.constant dense<0.000000e+00> : vector<8x512xf32>
    %135 = tpu.matmul %134, %7, %cst_45 {dimension_numbers = #tpu.dot_dimension_numbers<[1], [0], [0], [1], [0, 0, 1, 1], [], []>} : vector<8x128xbf16>, vector<128x512xbf16>, vector<8x512xf32> -> vector<8x512xf32>
    %136 = arith.addf %133, %135 : vector<8x512xf32>
    %137 = arith.addf %136, %16 : vector<8x512xf32>
    %138 = vector.extract_strided_slice %137 {offsets = [0, 0], sizes = [8, 128], strides = [1, 1]} : vector<8x512xf32> to vector<8x128xf32>
    %139 = arith.negf %138 : vector<8x128xf32>
    %140 = math.exp %139 : vector<8x128xf32>
    %cst_46 = arith.constant 1.000000e+00 : f32
    %141 = vector.broadcast %cst_46 : f32 to vector<8x128xf32>
    %142 = arith.addf %141, %140 : vector<8x128xf32>
    %143 = arith.divf %141, %142 : vector<8x128xf32>
    %144 = vector.extract_strided_slice %137 {offsets = [0, 128], sizes = [8, 128], strides = [1, 1]} : vector<8x512xf32> to vector<8x128xf32>
    %145 = arith.negf %144 : vector<8x128xf32>
    %146 = math.exp %145 : vector<8x128xf32>
    %cst_47 = arith.constant 1.000000e+00 : f32
    %147 = vector.broadcast %cst_47 : f32 to vector<8x128xf32>
    %148 = arith.addf %147, %146 : vector<8x128xf32>
    %149 = arith.divf %147, %148 : vector<8x128xf32>
    %150 = vector.extract_strided_slice %137 {offsets = [0, 256], sizes = [8, 128], strides = [1, 1]} : vector<8x512xf32> to vector<8x128xf32>
    %151 = math.tanh %150 : vector<8x128xf32>
    %152 = vector.extract_strided_slice %137 {offsets = [0, 384], sizes = [8, 128], strides = [1, 1]} : vector<8x512xf32> to vector<8x128xf32>
    %153 = arith.negf %152 : vector<8x128xf32>
    %154 = math.exp %153 : vector<8x128xf32>
    %cst_48 = arith.constant 1.000000e+00 : f32
    %155 = vector.broadcast %cst_48 : f32 to vector<8x128xf32>
    %156 = arith.addf %155, %154 : vector<8x128xf32>
    %157 = arith.divf %155, %156 : vector<8x128xf32>
    %158 = arith.mulf %149, %123 : vector<8x128xf32>
    %159 = arith.mulf %143, %151 : vector<8x128xf32>
    %160 = arith.addf %158, %159 : vector<8x128xf32>
    %161 = math.tanh %160 : vector<8x128xf32>
    %162 = arith.mulf %157, %161 : vector<8x128xf32>
    %163 = arith.index_cast %c3_i32 : i32 to index
    %c0_49 = arith.constant 0 : index
    %c0_50 = arith.constant 0 : index
    %164 = vector.load %arg12[%163, %c0_49, %c0_50] : memref<8x8x128xf32, #tpu.memory_space<vmem>>, vector<1x8x128xf32>
    %165 = vector.shape_cast %164 : vector<1x8x128xf32> to vector<8x128xf32>
    %166 = vector.shape_cast %162 : vector<8x128xf32> to vector<1x8x128xf32>
    tpu.vector_store %arg12[%163, %c0_49, %c0_50], %166 {strides = array<i32>} : memref<8x8x128xf32, #tpu.memory_space<vmem>>, vector<1x8x128xf32>,
    %c4_i32 = arith.constant 4 : i32
    %c8_i32_51 = arith.constant 8 : i32
    %167 = arith.muli %c4_i32, %c8_i32_51 : i32
    %168 = tpu.assume_multiple %167, 8 : i32
    %169 = arith.index_cast %168 : i32 to index
    %c0_52 = arith.constant 0 : index
    %170 = vector.load %arg11[%169, %c0_52] : memref<64x512xf32, #tpu.memory_space<vmem>>, vector<8x512xf32>
    %171 = arith.truncf %162 : vector<8x128xf32> to vector<8x128xbf16>
    %cst_53 = arith.constant dense<0.000000e+00> : vector<8x512xf32>
    %172 = tpu.matmul %171, %7, %cst_53 {dimension_numbers = #tpu.dot_dimension_numbers<[1], [0], [0], [1], [0, 0, 1, 1], [], []>} : vector<8x128xbf16>, vector<128x512xbf16>, vector<8x512xf32> -> vector<8x512xf32>
    %173 = arith.addf %170, %172 : vector<8x512xf32>
    %174 = arith.addf %173, %16 : vector<8x512xf32>
    %175 = vector.extract_strided_slice %174 {offsets = [0, 0], sizes = [8, 128], strides = [1, 1]} : vector<8x512xf32> to vector<8x128xf32>
    %176 = arith.negf %175 : vector<8x128xf32>
    %177 = math.exp %176 : vector<8x128xf32>
    %cst_54 = arith.constant 1.000000e+00 : f32
    %178 = vector.broadcast %cst_54 : f32 to vector<8x128xf32>
    %179 = arith.addf %178, %177 : vector<8x128xf32>
    %180 = arith.divf %178, %179 : vector<8x128xf32>
    %181 = vector.extract_strided_slice %174 {offsets = [0, 128], sizes = [8, 128], strides = [1, 1]} : vector<8x512xf32> to vector<8x128xf32>
    %182 = arith.negf %181 : vector<8x128xf32>
    %183 = math.exp %182 : vector<8x128xf32>
    %cst_55 = arith.constant 1.000000e+00 : f32
    %184 = vector.broadcast %cst_55 : f32 to vector<8x128xf32>
    %185 = arith.addf %184, %183 : vector<8x128xf32>
    %186 = arith.divf %184, %185 : vector<8x128xf32>
    %187 = vector.extract_strided_slice %174 {offsets = [0, 256], sizes = [8, 128], strides = [1, 1]} : vector<8x512xf32> to vector<8x128xf32>
    %188 = math.tanh %187 : vector<8x128xf32>
    %189 = vector.extract_strided_slice %174 {offsets = [0, 384], sizes = [8, 128], strides = [1, 1]} : vector<8x512xf32> to vector<8x128xf32>
    %190 = arith.negf %189 : vector<8x128xf32>
    %191 = math.exp %190 : vector<8x128xf32>
    %cst_56 = arith.constant 1.000000e+00 : f32
    %192 = vector.broadcast %cst_56 : f32 to vector<8x128xf32>
    %193 = arith.addf %192, %191 : vector<8x128xf32>
    %194 = arith.divf %192, %193 : vector<8x128xf32>
    %195 = arith.mulf %186, %160 : vector<8x128xf32>
    %196 = arith.mulf %180, %188 : vector<8x128xf32>
    %197 = arith.addf %195, %196 : vector<8x128xf32>
    %198 = math.tanh %197 : vector<8x128xf32>
    %199 = arith.mulf %194, %198 : vector<8x128xf32>
    %200 = arith.index_cast %c4_i32 : i32 to index
    %c0_57 = arith.constant 0 : index
    %c0_58 = arith.constant 0 : index
    %201 = vector.load %arg12[%200, %c0_57, %c0_58] : memref<8x8x128xf32, #tpu.memory_space<vmem>>, vector<1x8x128xf32>
    %202 = vector.shape_cast %201 : vector<1x8x128xf32> to vector<8x128xf32>
    %203 = vector.shape_cast %199 : vector<8x128xf32> to vector<1x8x128xf32>
    tpu.vector_store %arg12[%200, %c0_57, %c0_58], %203 {strides = array<i32>} : memref<8x8x128xf32, #tpu.memory_space<vmem>>, vector<1x8x128xf32>,
    %c5_i32 = arith.constant 5 : i32
    %c8_i32_59 = arith.constant 8 : i32
    %204 = arith.muli %c5_i32, %c8_i32_59 : i32
    %205 = tpu.assume_multiple %204, 8 : i32
    %206 = arith.index_cast %205 : i32 to index
    %c0_60 = arith.constant 0 : index
    %207 = vector.load %arg11[%206, %c0_60] : memref<64x512xf32, #tpu.memory_space<vmem>>, vector<8x512xf32>
    %208 = arith.truncf %199 : vector<8x128xf32> to vector<8x128xbf16>
    %cst_61 = arith.constant dense<0.000000e+00> : vector<8x512xf32>
    %209 = tpu.matmul %208, %7, %cst_61 {dimension_numbers = #tpu.dot_dimension_numbers<[1], [0], [0], [1], [0, 0, 1, 1], [], []>} : vector<8x128xbf16>, vector<128x512xbf16>, vector<8x512xf32> -> vector<8x512xf32>
    %210 = arith.addf %207, %209 : vector<8x512xf32>
    %211 = arith.addf %210, %16 : vector<8x512xf32>
    %212 = vector.extract_strided_slice %211 {offsets = [0, 0], sizes = [8, 128], strides = [1, 1]} : vector<8x512xf32> to vector<8x128xf32>
    %213 = arith.negf %212 : vector<8x128xf32>
    %214 = math.exp %213 : vector<8x128xf32>
    %cst_62 = arith.constant 1.000000e+00 : f32
    %215 = vector.broadcast %cst_62 : f32 to vector<8x128xf32>
    %216 = arith.addf %215, %214 : vector<8x128xf32>
    %217 = arith.divf %215, %216 : vector<8x128xf32>
    %218 = vector.extract_strided_slice %211 {offsets = [0, 128], sizes = [8, 128], strides = [1, 1]} : vector<8x512xf32> to vector<8x128xf32>
    %219 = arith.negf %218 : vector<8x128xf32>
    %220 = math.exp %219 : vector<8x128xf32>
    %cst_63 = arith.constant 1.000000e+00 : f32
    %221 = vector.broadcast %cst_63 : f32 to vector<8x128xf32>
    %222 = arith.addf %221, %220 : vector<8x128xf32>
    %223 = arith.divf %221, %222 : vector<8x128xf32>
    %224 = vector.extract_strided_slice %211 {offsets = [0, 256], sizes = [8, 128], strides = [1, 1]} : vector<8x512xf32> to vector<8x128xf32>
    %225 = math.tanh %224 : vector<8x128xf32>
    %226 = vector.extract_strided_slice %211 {offsets = [0, 384], sizes = [8, 128], strides = [1, 1]} : vector<8x512xf32> to vector<8x128xf32>
    %227 = arith.negf %226 : vector<8x128xf32>
    %228 = math.exp %227 : vector<8x128xf32>
    %cst_64 = arith.constant 1.000000e+00 : f32
    %229 = vector.broadcast %cst_64 : f32 to vector<8x128xf32>
    %230 = arith.addf %229, %228 : vector<8x128xf32>
    %231 = arith.divf %229, %230 : vector<8x128xf32>
    %232 = arith.mulf %223, %197 : vector<8x128xf32>
    %233 = arith.mulf %217, %225 : vector<8x128xf32>
    %234 = arith.addf %232, %233 : vector<8x128xf32>
    %235 = math.tanh %234 : vector<8x128xf32>
    %236 = arith.mulf %231, %235 : vector<8x128xf32>
    %237 = arith.index_cast %c5_i32 : i32 to index
    %c0_65 = arith.constant 0 : index
    %c0_66 = arith.constant 0 : index
    %238 = vector.load %arg12[%237, %c0_65, %c0_66] : memref<8x8x128xf32, #tpu.memory_space<vmem>>, vector<1x8x128xf32>
    %239 = vector.shape_cast %238 : vector<1x8x128xf32> to vector<8x128xf32>
    %240 = vector.shape_cast %236 : vector<8x128xf32> to vector<1x8x128xf32>
    tpu.vector_store %arg12[%237, %c0_65, %c0_66], %240 {strides = array<i32>} : memref<8x8x128xf32, #tpu.memory_space<vmem>>, vector<1x8x128xf32>,
    %c6_i32 = arith.constant 6 : i32
    %c8_i32_67 = arith.constant 8 : i32
    %241 = arith.muli %c6_i32, %c8_i32_67 : i32
    %242 = tpu.assume_multiple %241, 8 : i32
    %243 = arith.index_cast %242 : i32 to index
    %c0_68 = arith.constant 0 : index
    %244 = vector.load %arg11[%243, %c0_68] : memref<64x512xf32, #tpu.memory_space<vmem>>, vector<8x512xf32>
    %245 = arith.truncf %236 : vector<8x128xf32> to vector<8x128xbf16>
    %cst_69 = arith.constant dense<0.000000e+00> : vector<8x512xf32>
    %246 = tpu.matmul %245, %7, %cst_69 {dimension_numbers = #tpu.dot_dimension_numbers<[1], [0], [0], [1], [0, 0, 1, 1], [], []>} : vector<8x128xbf16>, vector<128x512xbf16>, vector<8x512xf32> -> vector<8x512xf32>
    %247 = arith.addf %244, %246 : vector<8x512xf32>
    %248 = arith.addf %247, %16 : vector<8x512xf32>
    %249 = vector.extract_strided_slice %248 {offsets = [0, 0], sizes = [8, 128], strides = [1, 1]} : vector<8x512xf32> to vector<8x128xf32>
    %250 = arith.negf %249 : vector<8x128xf32>
    %251 = math.exp %250 : vector<8x128xf32>
    %cst_70 = arith.constant 1.000000e+00 : f32
    %252 = vector.broadcast %cst_70 : f32 to vector<8x128xf32>
    %253 = arith.addf %252, %251 : vector<8x128xf32>
    %254 = arith.divf %252, %253 : vector<8x128xf32>
    %255 = vector.extract_strided_slice %248 {offsets = [0, 128], sizes = [8, 128], strides = [1, 1]} : vector<8x512xf32> to vector<8x128xf32>
    %256 = arith.negf %255 : vector<8x128xf32>
    %257 = math.exp %256 : vector<8x128xf32>
    %cst_71 = arith.constant 1.000000e+00 : f32
    %258 = vector.broadcast %cst_71 : f32 to vector<8x128xf32>
    %259 = arith.addf %258, %257 : vector<8x128xf32>
    %260 = arith.divf %258, %259 : vector<8x128xf32>
    %261 = vector.extract_strided_slice %248 {offsets = [0, 256], sizes = [8, 128], strides = [1, 1]} : vector<8x512xf32> to vector<8x128xf32>
    %262 = math.tanh %261 : vector<8x128xf32>
    %263 = vector.extract_strided_slice %248 {offsets = [0, 384], sizes = [8, 128], strides = [1, 1]} : vector<8x512xf32> to vector<8x128xf32>
    %264 = arith.negf %263 : vector<8x128xf32>
    %265 = math.exp %264 : vector<8x128xf32>
    %cst_72 = arith.constant 1.000000e+00 : f32
    %266 = vector.broadcast %cst_72 : f32 to vector<8x128xf32>
    %267 = arith.addf %266, %265 : vector<8x128xf32>
    %268 = arith.divf %266, %267 : vector<8x128xf32>
    %269 = arith.mulf %260, %234 : vector<8x128xf32>
    %270 = arith.mulf %254, %262 : vector<8x128xf32>
    %271 = arith.addf %269, %270 : vector<8x128xf32>
    %272 = math.tanh %271 : vector<8x128xf32>
    %273 = arith.mulf %268, %272 : vector<8x128xf32>
    %274 = arith.index_cast %c6_i32 : i32 to index
    %c0_73 = arith.constant 0 : index
    %c0_74 = arith.constant 0 : index
    %275 = vector.load %arg12[%274, %c0_73, %c0_74] : memref<8x8x128xf32, #tpu.memory_space<vmem>>, vector<1x8x128xf32>
    %276 = vector.shape_cast %275 : vector<1x8x128xf32> to vector<8x128xf32>
    %277 = vector.shape_cast %273 : vector<8x128xf32> to vector<1x8x128xf32>
    tpu.vector_store %arg12[%274, %c0_73, %c0_74], %277 {strides = array<i32>} : memref<8x8x128xf32, #tpu.memory_space<vmem>>, vector<1x8x128xf32>,
    %c7_i32 = arith.constant 7 : i32
    %c8_i32_75 = arith.constant 8 : i32
    %278 = arith.muli %c7_i32, %c8_i32_75 : i32
    %279 = tpu.assume_multiple %278, 8 : i32
    %280 = arith.index_cast %279 : i32 to index
    %c0_76 = arith.constant 0 : index
    %281 = vector.load %arg11[%280, %c0_76] : memref<64x512xf32, #tpu.memory_space<vmem>>, vector<8x512xf32>
    %282 = arith.truncf %273 : vector<8x128xf32> to vector<8x128xbf16>
    %cst_77 = arith.constant dense<0.000000e+00> : vector<8x512xf32>
    %283 = tpu.matmul %282, %7, %cst_77 {dimension_numbers = #tpu.dot_dimension_numbers<[1], [0], [0], [1], [0, 0, 1, 1], [], []>} : vector<8x128xbf16>, vector<128x512xbf16>, vector<8x512xf32> -> vector<8x512xf32>
    %284 = arith.addf %281, %283 : vector<8x512xf32>
    %285 = arith.addf %284, %16 : vector<8x512xf32>
    %286 = vector.extract_strided_slice %285 {offsets = [0, 0], sizes = [8, 128], strides = [1, 1]} : vector<8x512xf32> to vector<8x128xf32>
    %287 = arith.negf %286 : vector<8x128xf32>
    %288 = math.exp %287 : vector<8x128xf32>
    %cst_78 = arith.constant 1.000000e+00 : f32
    %289 = vector.broadcast %cst_78 : f32 to vector<8x128xf32>
    %290 = arith.addf %289, %288 : vector<8x128xf32>
    %291 = arith.divf %289, %290 : vector<8x128xf32>
    %292 = vector.extract_strided_slice %285 {offsets = [0, 128], sizes = [8, 128], strides = [1, 1]} : vector<8x512xf32> to vector<8x128xf32>
    %293 = arith.negf %292 : vector<8x128xf32>
    %294 = math.exp %293 : vector<8x128xf32>
    %cst_79 = arith.constant 1.000000e+00 : f32
    %295 = vector.broadcast %cst_79 : f32 to vector<8x128xf32>
    %296 = arith.addf %295, %294 : vector<8x128xf32>
    %297 = arith.divf %295, %296 : vector<8x128xf32>
    %298 = vector.extract_strided_slice %285 {offsets = [0, 256], sizes = [8, 128], strides = [1, 1]} : vector<8x512xf32> to vector<8x128xf32>
    %299 = math.tanh %298 : vector<8x128xf32>
    %300 = vector.extract_strided_slice %285 {offsets = [0, 384], sizes = [8, 128], strides = [1, 1]} : vector<8x512xf32> to vector<8x128xf32>
    %301 = arith.negf %300 : vector<8x128xf32>
    %302 = math.exp %301 : vector<8x128xf32>
    %cst_80 = arith.constant 1.000000e+00 : f32
    %303 = vector.broadcast %cst_80 : f32 to vector<8x128xf32>
    %304 = arith.addf %303, %302 : vector<8x128xf32>
    %305 = arith.divf %303, %304 : vector<8x128xf32>
    %306 = arith.mulf %297, %271 : vector<8x128xf32>
    %307 = arith.mulf %291, %299 : vector<8x128xf32>
    %308 = arith.addf %306, %307 : vector<8x128xf32>
    %309 = math.tanh %308 : vector<8x128xf32>
    %310 = arith.mulf %305, %309 : vector<8x128xf32>
    %311 = arith.index_cast %c7_i32 : i32 to index
    %c0_81 = arith.constant 0 : index
    %c0_82 = arith.constant 0 : index
    %312 = vector.load %arg12[%311, %c0_81, %c0_82] : memref<8x8x128xf32, #tpu.memory_space<vmem>>, vector<1x8x128xf32>
    %313 = vector.shape_cast %312 : vector<1x8x128xf32> to vector<8x128xf32>
    %314 = vector.shape_cast %310 : vector<8x128xf32> to vector<1x8x128xf32>
    tpu.vector_store %arg12[%311, %c0_81, %c0_82], %314 {strides = array<i32>} : memref<8x8x128xf32, #tpu.memory_space<vmem>>, vector<1x8x128xf32>,
    %c8_i32_83 = arith.constant 8 : i32
    %c0_84 = arith.constant 0 : index
    %c0_85 = arith.constant 0 : index
    %c0_86 = arith.constant 0 : index
    %315 = vector.load %arg12[%c0_84, %c0_85, %c0_86] : memref<8x8x128xf32, #tpu.memory_space<vmem>>, vector<8x8x128xf32>
    %316 = vector.shape_cast %315 : vector<8x8x128xf32> to vector<64x128xf32>
    %317 = arith.truncf %316 : vector<64x128xf32> to vector<64x128xbf16>
    %c0_87 = arith.constant 0 : index
    %c0_88 = arith.constant 0 : index
    %318 = vector.load %arg8[%c0_87, %c0_88] : memref<128x512xbf16, #tpu.memory_space<vmem>>, vector<128x512xbf16>
    %cst_89 = arith.constant dense<0.000000e+00> : vector<64x512xf32>
    %319 = tpu.matmul %317, %318, %cst_89 {dimension_numbers = #tpu.dot_dimension_numbers<[1], [0], [0], [1], [0, 0, 1, 1], [], []>} : vector<64x128xbf16>, vector<128x512xbf16>, vector<64x512xf32> -> vector<64x512xf32>
    %c0_90 = arith.constant 0 : index
    %c0_91 = arith.constant 0 : index
    %320 = vector.load %arg9[%c0_90, %c0_91] : memref<1x512xf32, #tpu.memory_space<vmem>>, vector<1x512xf32>
    %321 = vector.broadcast %320 : vector<1x512xf32> to vector<64x512xf32>
    %322 = arith.addf %319, %321 : vector<64x512xf32>
    %c0_92 = arith.constant 0 : index
    %c0_93 = arith.constant 0 : index
    %323 = vector.load %arg10[%c0_92, %c0_93] : memref<64x512xf32, #tpu.memory_space<vmem>>, vector<64x512xf32>
    tpu.vector_store %arg10[%c0_92, %c0_93], %322 {strides = array<i32>} : memref<64x512xf32, #tpu.memory_space<vmem>>, vector<64x512xf32>,
    return
  }
  func.func @transform_0(%arg0: i32) -> (i32, i32) {
    %c0_i32 = arith.constant 0 : i32
    %c0_i32_0 = arith.constant 0 : i32
    %c0_i32_1 = arith.constant 0 : i32
    return %c0_i32, %c0_i32_0 : i32, i32
  }
  func.func @transform_1(%arg0: i32) -> (i32, i32) {
    %c0_i32 = arith.constant 0 : i32
    %c0_i32_0 = arith.constant 0 : i32
    %c0_i32_1 = arith.constant 0 : i32
    return %c0_i32, %c0_i32_0 : i32, i32
  }
  func.func @transform_2(%arg0: i32) -> (i32, i32) {
    %c0_i32 = arith.constant 0 : i32
    %c0_i32_0 = arith.constant 0 : i32
    %c0_i32_1 = arith.constant 0 : i32
    return %c0_i32, %c0_i32_0 : i32, i32
  }
  func.func @transform_3(%arg0: i32) -> (i32, i32) {
    %c0_i32 = arith.constant 0 : i32
    %c0_i32_0 = arith.constant 0 : i32
    %c0_i32_1 = arith.constant 0 : i32
    return %c0_i32, %c0_i32_0 : i32, i32
  }
  func.func @transform_4(%arg0: i32) -> (i32, i32) {
    %c0_i32 = arith.constant 0 : i32
    %c0_i32_0 = arith.constant 0 : i32
    %c0_i32_1 = arith.constant 0 : i32
    return %c0_i32, %c0_i32_0 : i32, i32
  }
  func.func @transform_5(%arg0: i32) -> (i32, i32) {
    %c0_i32 = arith.constant 0 : i32
    %c0_i32_0 = arith.constant 0 : i32
    %c0_i32_1 = arith.constant 0 : i32
    return %c0_i32, %c0_i32_0 : i32, i32
  }
  func.func @transform_6(%arg0: i32) -> (i32, i32) {
    %c0_i32 = arith.constant 0 : i32
    %c0_i32_0 = arith.constant 0 : i32
    %c0_i32_1 = arith.constant 0 : i32
    return %c0_i32, %c0_i32_0 : i32, i32
  }
  func.func @transform_7(%arg0: i32) -> (i32, i32) {
    %c0_i32 = arith.constant 0 : i32
    %c0_i32_0 = arith.constant 0 : i32
    %c0_i32_1 = arith.constant 0 : i32
    return %c0_i32, %c0_i32_0 : i32, i32
  }
  func.func @transform_8(%arg0: i32) -> (i32, i32) {
    %c0_i32 = arith.constant 0 : i32
    %c0_i32_0 = arith.constant 0 : i32
    %c0_i32_1 = arith.constant 0 : i32
    return %c0_i32, %c0_i32_0 : i32, i32
  }
  func.func @transform_9(%arg0: i32) -> (i32, i32) {
    %c0_i32 = arith.constant 0 : i32
    %c0_i32_0 = arith.constant 0 : i32
    %c0_i32_1 = arith.constant 0 : i32
    return %c0_i32, %c0_i32_0 : i32, i32
  }
}

</mosaic_0001>

<bundles_post_ra>
// kernel: tpu_custom_call.1
= control target key start
LH: loop header
LB: loop body
LE: loop exit
PB: predicated region body
PF: predicated region fallthrough
CT: control target
= control target key end

     0   :  { %14 = vsyncpa [#allocation5], 0  ;;  %s3863_s0 = inlined_call_operand.hbm [shape: bf16[8,64], index: 0, kind: input, shape index: {}]   ;;  %s3864_s1 = inlined_call_operand.hbm [shape: bf16[56,128], index: 1, kind: input, shape index: {}]   ;;  %s3865_s2 = inlined_call_operand.hbm [shape: bf16[64,128], index: 2, kind: input, shape index: {}]   ;;  %s3866_s3 = inlined_call_operand.vmem [shape: f32[1,128], index: 3, kind: input, shape index: {}]   ;;  %s3867_s4 = inlined_call_operand.hbm [shape: bf16[128,512], index: 4, kind: input, shape index: {}]   ;;  %s3868_s5 = inlined_call_operand.hbm [shape: bf16[128,512], index: 5, kind: input, shape index: {}]   ;;  %s3869_s6 = inlined_call_operand.vmem [shape: f32[1,512], index: 6, kind: input, shape index: {}]   ;;  %s3870_s7 = inlined_call_operand.hbm [shape: bf16[128,512], index: 7, kind: input, shape index: {}]   ;;  %s3871_s8 = inlined_call_operand.vmem [shape: f32[1,512], index: 8, kind: input, shape index: {}]   ;;  %s3872_s9 = inlined_call_operand.hbm [shape: f32[64,512], index: 9, kind: output, shape index: {}]  }
   0x1   :  { %15 = vsyncpa [#allocation8], 0 }
   0x2   :  { %16 = vsyncpa [#allocation11], 0 }
   0x3   :  { %17 = vsyncpa [#allocation14], 0 }
   0x4   :  { %18 = vsyncpa [#allocation6], 0  ;;  %s2966_s30 = smov [#allocation7]   ;;  %s2802_s13 = scalar_lea.hbm %s3864_s1, 448 }
   0x5   :  { %s34_s10 = sshll.u32 %s2966_s30, 4  ;;  %p2803_p0 = scmp.ne.s32.totalorder %s3864_s1, %s2802_s13  ;;  %s35_s10 = int_to_ptr.vmem [resolvable:$true] %s34_s10 }
   0x6   :  { %p2806_p1 = scmp.lt.u32.totalorder %s2802_s13, %s3864_s1 }
   0x8   :  { %p2808_p2 = pnand %p2806_p1, %p2803_p0 }
   0xa   :  { %2811 = shalt.err (!%p2808_p2)
}
   0xb   :  { %s2812_s18 = scalar_lea.vmem %s35_s10, 448  ;;  %p2817_p4 = scmp.lt.s32.totalorder %s35_s10, %s35_s10 }
   0xc   :  { %p2813_p3 = scmp.ne.s32.totalorder %s35_s10, %s2812_s18  ;;  %p2818_p5 = scmp.lt.s32.totalorder %s2812_s18, %s2812_s18 }
   0xe   :  { %p2819_p6 = por %p2818_p5, %p2817_p4 }
  0x10   :  { %p2820_p7 = pnand %p2819_p6, %p2813_p3 }
  0x12   :  { %2823 = shalt.err (!%p2820_p7)
}
  0x13   :  { %s2967_s19 = smov 64   ;;  %s2968_s20 = smov 4  }
  0x14   :  { %40 = dma.hbm_to_vmem [thread:$0]  %s3864_s1, 448, %s35_s10, [#allocation8], %s2967_s19, %s2967_s19, %s2968_s20  }
  0x15   :  { %s2969_s23 = smov [#allocation10]   ;;  %s2824_s27 = scalar_lea.hbm %s3867_s4, 4096 }
  0x16   :  { %s60_s24 = sshll.u32 %s2969_s23, 4  ;;  %p2825_p8 = scmp.ne.s32.totalorder %s3867_s4, %s2824_s27  ;;  %s61_s24 = int_to_ptr.vmem [resolvable:$true] %s60_s24 }
  0x17   :  { %p2828_p9 = scmp.lt.u32.totalorder %s2824_s27, %s3867_s4 }
  0x19   :  { %p2830_p10 = pnand %p2828_p9, %p2825_p8 }
  0x1b   :  { %2833 = shalt.err (!%p2830_p10)
}
  0x1c   :  { %s2834_s12 = scalar_lea.vmem %s61_s24, 4096  ;;  %p2839_p12 = scmp.lt.s32.totalorder %s61_s24, %s61_s24 }
  0x1d   :  { %p2835_p11 = scmp.ne.s32.totalorder %s61_s24, %s2834_s12  ;;  %p2840_p13 = scmp.lt.s32.totalorder %s2834_s12, %s2834_s12 }
  0x1f   :  { %p2841_p0 = por %p2840_p13, %p2839_p12 }
  0x21   :  { %p2842_p1 = pnand %p2841_p0, %p2835_p11 }
  0x23   :  { %2845 = shalt.err (!%p2842_p1)
}
  0x24   :  { %s2970_s1 = smov 256   ;;  %s2971_s10 = smov 16  }
  0x25   :  { %66 = dma.hbm_to_vmem [thread:$0]  %s3867_s4, 4096, %s61_s24, [#allocation11], %s2970_s1, %s2970_s1, %s2971_s10  }
  0x26   :  { %s2972_s15 = smov [#allocation4]   ;;  %s2973_s17 = smov [#allocation9]  }
  0x27   :  { %s25_s16 = sshll.u32 %s2972_s15, 4  ;;  %s46_s18 = sshll.u32 %s2973_s17, 4  ;;  %s26_s16 = int_to_ptr.vmem [resolvable:$true] %s25_s16  ;;  %s3062_s18 = int_to_ptr.vmem [resolvable:$true] %s46_s18 }
  0x28   :  { %s2846_s23 = scalar_lea.hbm %s3863_s0, 64 }
  0x29   :  { %p2847_p2 = scmp.ne.s32.totalorder %s3863_s0, %s2846_s23  ;;  %p2850_p3 = scmp.lt.u32.totalorder %s2846_s23, %s3863_s0 }
  0x2b   :  { %p2852_p4 = pnand %p2850_p3, %p2847_p2 }
  0x2d   :  { %2855 = shalt.err (!%p2852_p4)
}
  0x2e   :  { %s2856_s4 = scalar_lea.vmem %s26_s16, 64  ;;  %p2861_p6 = scmp.lt.s32.totalorder %s26_s16, %s26_s16 }
  0x2f   :  { %p2857_p5 = scmp.ne.s32.totalorder %s26_s16, %s2856_s4  ;;  %p2862_p7 = scmp.lt.s32.totalorder %s2856_s4, %s2856_s4 }
  0x31   :  { %p2863_p8 = por %p2862_p7, %p2861_p6 }
  0x33   :  { %p2864_p9 = pnand %p2863_p8, %p2857_p5 }
  0x35   :  { %2867 = shalt.err (!%p2864_p9)
}
  0x36   :  { %28 = dma.hbm_to_vmem [thread:$0]  %s3863_s0, 64, %s26_s16, [#allocation5]  }
  0x37   :  { %s2868_s12 = scalar_lea.hbm %s3865_s2, 512 }
  0x38   :  { %p2869_p10 = scmp.ne.s32.totalorder %s3865_s2, %s2868_s12  ;;  %p2872_p11 = scmp.lt.u32.totalorder %s2868_s12, %s3865_s2 }
  0x3a   :  { %p2874_p12 = pnand %p2872_p11, %p2869_p10 }
  0x3c   :  { %2877 = shalt.err (!%p2874_p12)
}
  0x3d   :  { %s2878_s21 = scalar_lea.vmem %s3062_s18, 512  ;;  %p2883_p0 = scmp.lt.s32.totalorder %s3062_s18, %s3062_s18 }
  0x3e   :  { %p2879_p13 = scmp.ne.s32.totalorder %s3062_s18, %s2878_s21  ;;  %p2884_p1 = scmp.lt.s32.totalorder %s2878_s21, %s2878_s21 }
  0x40   :  { %p2885_p2 = por %p2884_p1, %p2883_p0 }
  0x42   :  { %p2886_p3 = pnand %p2885_p2, %p2879_p13 }
  0x44   :  { %2889 = shalt.err (!%p2886_p3)
}
  0x45   :  { %52 = dma.hbm_to_vmem [thread:$0]  %s3865_s2, 512, %s3062_s18, [#allocation8], %s2967_s19, %s2967_s19, %s2968_s20  }
  0x46   :  { %s2974_s22 = smov [#allocation12]   ;;  %s2975_s25 = smov [#allocation13]  }
  0x47   :  { %s72_s23 = sshll.u32 %s2974_s22, 4  ;;  %s86_s26 = sshll.u32 %s2975_s25, 4  ;;  %s73_s23 = int_to_ptr.vmem [resolvable:$true] %s72_s23  ;;  %s3096_s26 = int_to_ptr.vmem [resolvable:$true] %s86_s26 }
  0x48   :  { %s2890_s4 = scalar_lea.hbm %s3868_s5, 4096 }
  0x49   :  { %p2891_p4 = scmp.ne.s32.totalorder %s3868_s5, %s2890_s4  ;;  %p2894_p5 = scmp.lt.u32.totalorder %s2890_s4, %s3868_s5 }
  0x4b   :  { %p2896_p6 = pnand %p2894_p5, %p2891_p4 }
  0x4d   :  { %2899 = shalt.err (!%p2896_p6)
}
  0x4e   :  { %s2900_s2 = scalar_lea.vmem %s73_s23, 4096  ;;  %p2905_p8 = scmp.lt.s32.totalorder %s73_s23, %s73_s23 }
  0x4f   :  { %p2901_p7 = scmp.ne.s32.totalorder %s73_s23, %s2900_s2  ;;  %p2906_p9 = scmp.lt.s32.totalorder %s2900_s2, %s2900_s2 }
  0x51   :  { %p2907_p10 = por %p2906_p9, %p2905_p8 }
  0x53   :  { %p2908_p11 = pnand %p2907_p10, %p2901_p7 }
  0x55   :  { %2911 = shalt.err (!%p2908_p11)
}
  0x56   :  { %78 = dma.hbm_to_vmem [thread:$0]  %s3868_s5, 4096, %s73_s23, [#allocation11], %s2970_s1, %s2970_s1, %s2971_s10  }
  0x57   :  { %s2912_s13 = scalar_lea.hbm %s3870_s7, 4096 }
  0x58   :  { %p2913_p12 = scmp.ne.s32.totalorder %s3870_s7, %s2912_s13  ;;  %p2916_p13 = scmp.lt.u32.totalorder %s2912_s13, %s3870_s7 }
  0x5a   :  { %p2918_p0 = pnand %p2916_p13, %p2913_p12 }
  0x5c   :  { %2921 = shalt.err (!%p2918_p0)
}
  0x5d   :  { %s2922_s0 = scalar_lea.vmem %s3096_s26, 4096  ;;  %p2927_p2 = scmp.lt.s32.totalorder %s3096_s26, %s3096_s26 }
  0x5e   :  { %p2923_p1 = scmp.ne.s32.totalorder %s3096_s26, %s2922_s0  ;;  %p2928_p3 = scmp.lt.s32.totalorder %s2922_s0, %s2922_s0 }
  0x60   :  { %p2929_p4 = por %p2928_p3, %p2927_p2 }
  0x62   :  { %p2930_p5 = pnand %p2929_p4, %p2923_p1 }
  0x64   :  { %2933 = shalt.err (!%p2930_p5)
}
  0x65   :  { %92 = dma.hbm_to_vmem [thread:$0]  %s3870_s7, 4096, %s3096_s26, [#allocation14], %s2970_s1, %s2970_s1, %s2971_s10  }
  0x66   :  { %2956 = dma.done.wait [#allocation5], 64  }
  0x67   :  { %2957 = vsyncadd [#allocation5], 4294967232 }
  0x68   :  { %2958 = dma.done.wait [#allocation8], 960  }
  0x69   :  { %2959 = vsyncadd [#allocation8], 4294966336 }
  0x6a   :  { %2960 = dma.done.wait [#allocation11], 8192  }
  0x6b   :  { %2961 = vsyncadd [#allocation11], 4294959104 }
  0x6c   :  { %2962 = dma.done.wait [#allocation14], 4096  }
  0x6d   :  { %2963 = vsyncadd [#allocation14], 4294963200  ;;  %v2976_v0 = vmov 0.0   ;;  %vm2977_vm0 = vmmov 0   ;;  %v2490_v1 = vld [vmem:[#allocation9] sm:$0xff]   ;;  %v2491_v2 = vld [vmem:[#allocation9 + $0x8] sm:$0xff]  }
  0x6e   :  { %2446 = vmatprep.subr.bf16.mxu0 %v2976_v0  ;;  %2454 = vmatprep.mubr.msk.bf16.mxu0 %vm2977_vm0, %v2976_v0  ;;  %v3133_v3 = vld [vmem:[#allocation10 + $0x4] ss:$16 sps:$4 sm:$0xff]   ;;  %v3135_v5 = vld [vmem:[#allocation10] ss:$16 sps:$4 sm:$0xff]   ;;  %v2493_v7 = vld [vmem:[#allocation9 + $0x18] sm:$0xff]   ;;  %vm154_vm1 = vcmask 523264  }
  0x6f   :  { %2447 = vmatpush3.bf16.msra.mxu0 %v2490_v1  ;;  %v2492_v4 = vld [vmem:[#allocation9 + $0x10] sm:$0xff]   ;;  %423 = vmatprep.subr.bf16.mxu1 %v3133_v3  ;;  %v2498_v10 = vld [vmem:[#allocation10 + $0xc] ss:$16 sps:$4 sm:$0xff]   ;;  %v114_v13 = vld [vmem:[#allocation4] sm:$0xf]  ;;  %v3873_v38 = vmov 0  }
  0x70   :  { %2448 = vmatprep.subr.bf16.mxu0 %v2976_v0  ;;  %v3138_v6 = vld [vmem:[#allocation10 + $0x24] ss:$16 sps:$4 sm:$0xff]   ;;  %424 = vmatpush1.bf16.msra.mxu1 %v3135_v5  ;;  %v3142_v8 = vld [vmem:[#allocation10 + $0x20] ss:$16 sps:$4 sm:$0xff]   ;;  %v3152_v14 = vld [vmem:[#allocation10 + $0x8] ss:$16 sps:$4 sm:$0xff]  }
  0x71   :  { %425 = vmatprep.subr.bf16.mxu1 %v3138_v6  ;;  %v3144_v9 = vld [vmem:[#allocation10 + $0x44] ss:$16 sps:$4 sm:$0xff]   ;;  %v3147_v11 = vld [vmem:[#allocation10 + $0x40] ss:$16 sps:$4 sm:$0xff]   ;;  %v3154_v15 = vld [vmem:[#allocation10 + $0x2c] ss:$16 sps:$4 sm:$0xff]   ;;  %455 = vmatprep.mubr.bf16.mxu1 %v3873_v38 }
  0x72   :  { %v3150_v12 = vld [vmem:[#allocation10 + $0x64] ss:$16 sps:$4 sm:$0xff]   ;;  %v3157_v16 = vld [vmem:[#allocation10 + $0x60] ss:$16 sps:$4 sm:$0xff]   ;;  %v3163_v18 = vld [vmem:[#allocation10 + $0x28] ss:$16 sps:$4 sm:$0xff]  }
  0x73   :  { %2449 = vmatpush3.bf16.msra.mxu0 %v2491_v2  ;;  %v3160_v17 = vld [vmem:[#allocation10 + $0x84] ss:$16 sps:$4 sm:$0xff]   ;;  %v3166_v19 = vld [vmem:[#allocation10 + $0x4c] ss:$16 sps:$4 sm:$0xff]   ;;  %v3169_v20 = vld [vmem:[#allocation10 + $0x80] ss:$16 sps:$4 sm:$0xff]  }
  0x74   :  { %2450 = vmatprep.subr.bf16.mxu0 %v2976_v0  ;;  %426 = vmatpush1.bf16.msra.mxu1 %v3142_v8  ;;  %v3172_v21 = vld [vmem:[#allocation10 + $0xa4] ss:$16 sps:$4 sm:$0xff]   ;;  %v2508_v22 = vld [vmem:[#allocation10 + $0x48] ss:$16 sps:$4 sm:$0xff]   ;;  %v2516_v23 = vld [vmem:[#allocation10 + $0x6c] ss:$16 sps:$4 sm:$0xff]  }
  0x75   :  { %427 = vmatprep.subr.bf16.mxu1 %v3144_v9  ;;  %v3175_v24 = vld [vmem:[#allocation10 + $0xa0] ss:$16 sps:$4 sm:$0xff]   ;;  %v3178_v25 = vld [vmem:[#allocation10 + $0xc4] ss:$16 sps:$4 sm:$0xff]   ;;  %v2514_v26 = vld [vmem:[#allocation10 + $0x68] ss:$16 sps:$4 sm:$0xff]  }
  0x76   :  { %v2522_v27 = vld [vmem:[#allocation10 + $0x8c] ss:$16 sps:$4 sm:$0xff]   ;;  %v3182_v28 = vld [vmem:[#allocation10 + $0xc0] ss:$16 sps:$4 sm:$0xff]   ;;  %v2520_v29 = vld [vmem:[#allocation10 + $0x88] ss:$16 sps:$4 sm:$0xff]  }
  0x77   :  { %2451 = vmatpush3.bf16.msra.mxu0 %v2492_v4  ;;  %v2528_v30 = vld [vmem:[#allocation10 + $0xac] ss:$16 sps:$4 sm:$0xff]   ;;  %v2526_v31 = vld [vmem:[#allocation10 + $0xa8] ss:$16 sps:$4 sm:$0xff]   ;;  %v2536_v34 = vld [vmem:[#allocation10 + $0xe4] ss:$16 sps:$4 sm:$0xff]  }
  0x78   :  { %2452 = vmatprep.subr.bf16.mxu0 %v2976_v0  ;;  %428 = vmatpush1.bf16.msra.mxu1 %v3147_v11  ;;  %v2534_v32 = vld [vmem:[#allocation10 + $0xcc] ss:$16 sps:$4 sm:$0xff]   ;;  %v2532_v33 = vld [vmem:[#allocation10 + $0xc8] ss:$16 sps:$4 sm:$0xff]   ;;  %v2541_v37 = vld [vmem:[#allocation10 + $0xe0] ss:$16 sps:$4 sm:$0xff]  }
  0x79   :  { %429 = vmatprep.subr.bf16.mxu1 %v3150_v12  ;;  %v2540_v35 = vld [vmem:[#allocation10 + $0xec] ss:$16 sps:$4 sm:$0xff]   ;;  %v2538_v36 = vld [vmem:[#allocation10 + $0xe8] ss:$16 sps:$4 sm:$0xff]   ;;  %v2311_v39 = vld [vmem:[%s3866_s3] ss:$0 sm:$0xff] }
  0x7a   :  { %v3212_v46 = vld [vmem:[#allocation12 + $0x4] ss:$16 sps:$4 sm:$0xff]   ;;  %v3214_v47 = vld [vmem:[#allocation12 + $0xc] ss:$16 sps:$4 sm:$0xff]   ;;  %v3216_v49 = vld [vmem:[#allocation12] ss:$16 sps:$4 sm:$0xff]  }
  0x7b   :  { %2453 = vmatpush3.bf16.msra.mxu0 %v2493_v7  ;;  %v2542_v48 = vld [vmem:[#allocation7] sm:$0xff]   ;;  %v3224_v52 = vld [vmem:[#allocation12 + $0x2c] ss:$16 sps:$4 sm:$0xff]   ;;  %v3228_v53 = vld [vmem:[#allocation12 + $0x20] ss:$16 sps:$4 sm:$0xff]  }
  0x7c   :  { %464 = vmatprep.subr.bf16.mxu0 %v2498_v10  ;;  %430 = vmatpush1.bf16.msra.mxu1 %v3157_v16  ;;  %v3218_v50 = vld [vmem:[#allocation12 + $0x8] ss:$16 sps:$4 sm:$0xff]   ;;  %v3222_v51 = vld [vmem:[#allocation12 + $0x24] ss:$16 sps:$4 sm:$0xff]   ;;  %v3236_v56 = vld [vmem:[#allocation12 + $0x4c] ss:$16 sps:$4 sm:$0xff]  }
  0x7d   :  { %431 = vmatprep.subr.bf16.mxu1 %v3160_v17  ;;  %v3230_v54 = vld [vmem:[#allocation12 + $0x28] ss:$16 sps:$4 sm:$0xff]   ;;  %v3234_v55 = vld [vmem:[#allocation12 + $0x44] ss:$16 sps:$4 sm:$0xff]   ;;  %v2555_v57 = vld [vmem:[#allocation7 + $0x8] sm:$0xff]  }
  0x7e   :  { %2455 = vmatmul.mubr.msk.bf16.vlgmr.msra.gmra.mrb[0].mxu0 %vm154_vm1, %v114_v13  ;;  %v3242_v58 = vld [vmem:[#allocation12 + $0x40] ss:$16 sps:$4 sm:$0xff]   ;;  %v3244_v59 = vld [vmem:[#allocation12 + $0x48] ss:$16 sps:$4 sm:$0xff]   ;;  %v3248_v60 = vld [vmem:[#allocation12 + $0x64] ss:$16 sps:$4 sm:$0xff]  }
  0x7f   :  { %465 = vmatpush1.bf16.msra.mxu0 %v3152_v14  ;;  %496 = vmatprep.mubr.bf16.mxu0 %v3873_v38  ;;  %v3250_v61 = vld [vmem:[#allocation12 + $0x6c] ss:$16 sps:$4 sm:$0xff]   ;;  %v3254_v62 = vld [vmem:[#allocation12 + $0x60] ss:$16 sps:$4 sm:$0xff]   ;;  %v3256_v63 = vld [vmem:[#allocation12 + $0x68] ss:$16 sps:$4 sm:$0xff]  }
  0x80   :  { %466 = vmatprep.subr.bf16.mxu0 %v3154_v15  ;;  %432 = vmatpush1.bf16.msra.mxu1 %v3169_v20  ;;  %v3260_v0 = vld [vmem:[#allocation12 + $0x84] ss:$16 sps:$4 sm:$0xff]   ;;  %v3262_v1 = vld [vmem:[#allocation12 + $0x8c] ss:$16 sps:$4 sm:$0xff]   ;;  %v3270_v4 = vld [vmem:[#allocation12 + $0x88] ss:$16 sps:$4 sm:$0xff]  }
  0x81   :  { %433 = vmatprep.subr.bf16.mxu1 %v3172_v21  ;;  %v2568_v2 = vld [vmem:[#allocation7 + $0x10] sm:$0xff]   ;;  %v3280_v7 = vld [vmem:[#allocation12 + $0xa0] ss:$16 sps:$4 sm:$0xff]  }
  0x82   :  { %v3296_v13 = vld [vmem:[#allocation12 + $0xc8] ss:$16 sps:$4 sm:$0xff]  }
  0x83   :  { %467 = vmatpush1.bf16.msra.mxu0 %v3163_v18 }
  0x84   :  { %468 = vmatprep.subr.bf16.mxu0 %v3166_v19  ;;  %434 = vmatpush1.bf16.msra.mxu1 %v3175_v24 }
  0x85   :  { %435 = vmatprep.subr.bf16.mxu1 %v3178_v25 }
  0x87   :  { %469 = vmatpush1.bf16.msra.mxu0 %v2508_v22 }
  0x88   :  { %470 = vmatprep.subr.bf16.mxu0 %v2516_v23  ;;  %436 = vmatpush1.bf16.msra.mxu1 %v3182_v28 }
  0x89   :  { %437 = vmatprep.subr.bf16.mxu1 %v2536_v34 }
  0x8b   :  { %471 = vmatpush1.bf16.msra.mxu0 %v2514_v26 }
  0x8c   :  { %472 = vmatprep.subr.bf16.mxu0 %v2522_v27  ;;  %438 = vmatpush1.bf16.msra.mxu1 %v2541_v37 }
  0x8d   :  { %538 = vmatprep.subr.bf16.mxu1 %v3133_v3  ;;  %v3268_v3 = vld [vmem:[#allocation12 + $0x80] ss:$16 sps:$4 sm:$0xff]  }
  0x8f   :  { %473 = vmatpush1.bf16.msra.mxu0 %v2520_v29 }
  0x90   :  { %474 = vmatprep.subr.bf16.mxu0 %v2528_v30 }
  0x93   :  { %475 = vmatpush1.bf16.msra.mxu0 %v2526_v31 }
  0x94   :  { %476 = vmatprep.subr.bf16.mxu0 %v2534_v32 }
  0x97   :  { %477 = vmatpush1.bf16.msra.mxu0 %v2532_v33 }
  0x98   :  { %478 = vmatprep.subr.bf16.mxu0 %v2540_v35 }
  0x9b   :  { %479 = vmatpush1.bf16.msra.mxu0 %v2538_v36 }
  0x9c   :  { %609 = vmatprep.subr.bf16.mxu0 %v2498_v10  ;;  %v3288_v10 = vld [vmem:[#allocation12 + $0xcc] ss:$16 sps:$4 sm:$0xff]  }
 0x151   :  { %v192_v40 = vpop.f32.mrb[0].mxu0 }
 0x152   :  { %v193_v41 = vadd.f32 %v2311_v39, %v192_v40  ;;  %v2456_v42 = vpop.f32.mrb[1].mxu0 }
 0x153   :  { %v195_v43 = vpop.f32.mrb[2].mxu0 }
 0x154   :  { %v262_v44 = vpack.c.bf16 %v193_v41, %v193_v41  ;;  %v2457_v45 = vpop.f32.mrb[3].mxu0 }
 0x156   :  { %456 = vmatmul.mubr.bf16.vlgmr.msra.gmra.mrb[0].mxu1 %v262_v44  ;;  %497 = vmatmul.mubr.bf16.vlgmr.msra.gmra.mrb[4].mxu0 %v262_v44 }
 0x157   :  { %539 = vmatpush1.bf16.msra.mxu1 %v3135_v5  ;;  %610 = vmatpush1.bf16.msra.mxu0 %v3152_v14  ;;  %v3274_v5 = vld [vmem:[#allocation12 + $0xa4] ss:$16 sps:$4 sm:$0xff]  }
 0x158   :  { %540 = vmatprep.subr.bf16.mxu1 %v3138_v6  ;;  %611 = vmatprep.subr.bf16.mxu0 %v3154_v15  ;;  %v3276_v6 = vld [vmem:[#allocation12 + $0xac] ss:$16 sps:$4 sm:$0xff]   ;;  %v3300_v14 = vld [vmem:[#allocation12 + $0xe4] ss:$16 sps:$4 sm:$0xff]  }
 0x159   :  { %570 = vmatprep.mubr.bf16.mxu1 %v3873_v38  ;;  %641 = vmatprep.mubr.bf16.mxu0 %v3873_v38  ;;  %v3302_v15 = vld [vmem:[#allocation12 + $0xec] ss:$16 sps:$4 sm:$0xff]  }
 0x15b   :  { %541 = vmatpush1.bf16.msra.mxu1 %v3142_v8  ;;  %612 = vmatpush1.bf16.msra.mxu0 %v3163_v18  ;;  %v3282_v8 = vld [vmem:[#allocation12 + $0xa8] ss:$16 sps:$4 sm:$0xff]  }
 0x15c   :  { %542 = vmatprep.subr.bf16.mxu1 %v3144_v9  ;;  %613 = vmatprep.subr.bf16.mxu0 %v3166_v19  ;;  %v3286_v9 = vld [vmem:[#allocation12 + $0xc4] ss:$16 sps:$4 sm:$0xff]  }
 0x15f   :  { %543 = vmatpush1.bf16.msra.mxu1 %v3147_v11  ;;  %614 = vmatpush1.bf16.msra.mxu0 %v2508_v22  ;;  %v2581_v11 = vld [vmem:[#allocation7 + $0x18] ss:$0 sps:$4 sm:$0xff]  }
 0x160   :  { %544 = vmatprep.subr.bf16.mxu1 %v3150_v12  ;;  %615 = vmatprep.subr.bf16.mxu0 %v2516_v23  ;;  %v3294_v12 = vld [vmem:[#allocation12 + $0xc0] ss:$16 sps:$4 sm:$0xff]  }
 0x163   :  { %545 = vmatpush1.bf16.msra.mxu1 %v3157_v16  ;;  %616 = vmatpush1.bf16.msra.mxu0 %v2514_v26  ;;  %v3306_v16 = vld [vmem:[#allocation12 + $0xe0] ss:$16 sps:$4 sm:$0xff]  }
 0x164   :  { %546 = vmatprep.subr.bf16.mxu1 %v3160_v17  ;;  %617 = vmatprep.subr.bf16.mxu0 %v2522_v27  ;;  %v3308_v17 = vld [vmem:[#allocation12 + $0xe8] ss:$16 sps:$4 sm:$0xff]  }
 0x167   :  { %547 = vmatpush1.bf16.msra.mxu1 %v3169_v20  ;;  %618 = vmatpush1.bf16.msra.mxu0 %v2520_v29 }
 0x168   :  { %548 = vmatprep.subr.bf16.mxu1 %v3172_v21  ;;  %619 = vmatprep.subr.bf16.mxu0 %v2528_v30 }
 0x16b   :  { %549 = vmatpush1.bf16.msra.mxu1 %v3175_v24  ;;  %620 = vmatpush1.bf16.msra.mxu0 %v2526_v31 }
 0x16c   :  { %550 = vmatprep.subr.bf16.mxu1 %v3178_v25  ;;  %621 = vmatprep.subr.bf16.mxu0 %v2534_v32 }
 0x16f   :  { %551 = vmatpush1.bf16.msra.mxu1 %v3182_v28  ;;  %622 = vmatpush1.bf16.msra.mxu0 %v2532_v33 }
 0x170   :  { %552 = vmatprep.subr.bf16.mxu1 %v2536_v34  ;;  %623 = vmatprep.subr.bf16.mxu0 %v2540_v35 }
 0x173   :  { %553 = vmatpush1.bf16.msra.mxu1 %v2541_v37  ;;  %624 = vmatpush1.bf16.msra.mxu0 %v2538_v36 }
 0x174   :  { %897 = vmatprep.subr.bf16.mxu1 %v3212_v46  ;;  %938 = vmatprep.subr.bf16.mxu0 %v3214_v47 }
 0x176   :  { %571 = vmatmul.mubr.bf16.vlgmr.msra.gmra.mrb[4].mxu1 %v2542_v48  ;;  %642 = vmatmul.mubr.bf16.vlgmr.msra.gmra.mrb[8].mxu0 %v2542_v48 }
 0x177   :  { %898 = vmatpush1.bf16.msra.mxu1 %v3216_v49  ;;  %939 = vmatpush1.bf16.msra.mxu0 %v3218_v50 }
 0x178   :  { %899 = vmatprep.subr.bf16.mxu1 %v3222_v51  ;;  %940 = vmatprep.subr.bf16.mxu0 %v3224_v52 }
 0x179   :  { %580 = vmatprep.mubr.bf16.mxu1 %v3873_v38  ;;  %651 = vmatprep.mubr.bf16.mxu0 %v3873_v38 }
 0x17b   :  { %900 = vmatpush1.bf16.msra.mxu1 %v3228_v53  ;;  %941 = vmatpush1.bf16.msra.mxu0 %v3230_v54 }
 0x17c   :  { %901 = vmatprep.subr.bf16.mxu1 %v3234_v55  ;;  %942 = vmatprep.subr.bf16.mxu0 %v3236_v56 }
 0x17e   :  { %581 = vmatmul.mubr.bf16.gmra.mrb[8].mxu1 %v2555_v57  ;;  %652 = vmatmul.mubr.bf16.gmra.mrb[12].mxu0 %v2555_v57 }
 0x17f   :  { %902 = vmatpush1.bf16.msra.mxu1 %v3242_v58  ;;  %943 = vmatpush1.bf16.msra.mxu0 %v3244_v59 }
 0x180   :  { %903 = vmatprep.subr.bf16.mxu1 %v3248_v60  ;;  %944 = vmatprep.subr.bf16.mxu0 %v3250_v61 }
 0x181   :  { %590 = vmatprep.mubr.bf16.mxu1 %v3873_v38  ;;  %661 = vmatprep.mubr.bf16.mxu0 %v3873_v38 }
 0x183   :  { %904 = vmatpush1.bf16.msra.mxu1 %v3254_v62  ;;  %945 = vmatpush1.bf16.msra.mxu0 %v3256_v63 }
 0x184   :  { %905 = vmatprep.subr.bf16.mxu1 %v3260_v0  ;;  %946 = vmatprep.subr.bf16.mxu0 %v3262_v1 }
 0x186   :  { %591 = vmatmul.mubr.bf16.gmra.mrb[12].mxu1 %v2568_v2  ;;  %662 = vmatmul.mubr.bf16.gmra.mrb[16].mxu0 %v2568_v2 }
 0x187   :  { %906 = vmatpush1.bf16.msra.mxu1 %v3268_v3  ;;  %947 = vmatpush1.bf16.msra.mxu0 %v3270_v4 }
 0x188   :  { %907 = vmatprep.subr.bf16.mxu1 %v3274_v5  ;;  %948 = vmatprep.subr.bf16.mxu0 %v3276_v6 }
 0x189   :  { %600 = vmatprep.mubr.bf16.mxu1 %v3873_v38  ;;  %671 = vmatprep.mubr.bf16.mxu0 %v3873_v38 }
 0x18b   :  { %908 = vmatpush1.bf16.msra.mxu1 %v3280_v7  ;;  %949 = vmatpush1.bf16.msra.mxu0 %v3282_v8 }
 0x18c   :  { %909 = vmatprep.subr.bf16.mxu1 %v3286_v9  ;;  %950 = vmatprep.subr.bf16.mxu0 %v3288_v10 }
 0x18e   :  { %601 = vmatmul.mubr.bf16.gmra.mrb[16].mxu1 %v2581_v11  ;;  %672 = vmatmul.mubr.bf16.gmra.mrb[20].mxu0 %v2581_v11 }
 0x18f   :  { %910 = vmatpush1.bf16.msra.mxu1 %v3294_v12  ;;  %951 = vmatpush1.bf16.msra.mxu0 %v3296_v13 }
 0x190   :  { %911 = vmatprep.subr.bf16.mxu1 %v3300_v14  ;;  %952 = vmatprep.subr.bf16.mxu0 %v3302_v15 }
 0x191   :  { %929 = vmatprep.mubr.bf16.mxu1 %v3873_v38  ;;  %970 = vmatprep.mubr.bf16.mxu0 %v3873_v38 }
 0x193   :  { %912 = vmatpush1.bf16.msra.mxu1 %v3306_v16  ;;  %953 = vmatpush1.bf16.msra.mxu0 %v3308_v17 }
 0x194   :  { %1020 = vmatprep.subr.bf16.mxu1 %v3212_v46  ;;  %1061 = vmatprep.subr.bf16.mxu0 %v3214_v47 }
 0x196   :  { %930 = vmatmul.mubr.bf16.vlgmr.msra.gmra.mrb[20].mxu1 %v3873_v38  ;;  %971 = vmatmul.mubr.bf16.vlgmr.msra.gmra.mrb[24].mxu0 %v3873_v38 }
 0x197   :  { %1021 = vmatpush1.bf16.msra.mxu1 %v3216_v49  ;;  %1062 = vmatpush1.bf16.msra.mxu0 %v3218_v50 }
 0x198   :  { %1022 = vmatprep.subr.bf16.mxu1 %v3222_v51  ;;  %1063 = vmatprep.subr.bf16.mxu0 %v3224_v52 }
 0x199   :  { %1052 = vmatprep.mubr.bf16.mxu1 %v3873_v38  ;;  %1093 = vmatprep.mubr.bf16.mxu0 %v3873_v38 }
 0x19b   :  { %1023 = vmatpush1.bf16.msra.mxu1 %v3228_v53  ;;  %1064 = vmatpush1.bf16.msra.mxu0 %v3230_v54 }
 0x19c   :  { %1024 = vmatprep.subr.bf16.mxu1 %v3234_v55  ;;  %1065 = vmatprep.subr.bf16.mxu0 %v3236_v56 }
 0x19f   :  { %1025 = vmatpush1.bf16.msra.mxu1 %v3242_v58  ;;  %1066 = vmatpush1.bf16.msra.mxu0 %v3244_v59 }
 0x1a0   :  { %1026 = vmatprep.subr.bf16.mxu1 %v3248_v60  ;;  %1067 = vmatprep.subr.bf16.mxu0 %v3250_v61 }
 0x1a3   :  { %1027 = vmatpush1.bf16.msra.mxu1 %v3254_v62  ;;  %1068 = vmatpush1.bf16.msra.mxu0 %v3256_v63 }
 0x1a4   :  { %1028 = vmatprep.subr.bf16.mxu1 %v3260_v0  ;;  %1069 = vmatprep.subr.bf16.mxu0 %v3262_v1 }
 0x1a7   :  { %1029 = vmatpush1.bf16.msra.mxu1 %v3268_v3  ;;  %1070 = vmatpush1.bf16.msra.mxu0 %v3270_v4 }
 0x1a8   :  { %1030 = vmatprep.subr.bf16.mxu1 %v3274_v5  ;;  %1071 = vmatprep.subr.bf16.mxu0 %v3276_v6 }
 0x1ab   :  { %1031 = vmatpush1.bf16.msra.mxu1 %v3280_v7  ;;  %1072 = vmatpush1.bf16.msra.mxu0 %v3282_v8 }
 0x1ac   :  { %1032 = vmatprep.subr.bf16.mxu1 %v3286_v9  ;;  %1073 = vmatprep.subr.bf16.mxu0 %v3288_v10 }
 0x1af   :  { %1033 = vmatpush1.bf16.msra.mxu1 %v3294_v12  ;;  %1074 = vmatpush1.bf16.msra.mxu0 %v3296_v13 }
 0x1b0   :  { %1034 = vmatprep.subr.bf16.mxu1 %v3300_v14  ;;  %1075 = vmatprep.subr.bf16.mxu0 %v3302_v15 }
 0x1b3   :  { %1035 = vmatpush1.bf16.msra.mxu1 %v3306_v16  ;;  %1076 = vmatpush1.bf16.msra.mxu0 %v3308_v17 }
 0x1b4   :  { %1144 = vmatprep.subr.bf16.mxu1 %v3212_v46  ;;  %1185 = vmatprep.subr.bf16.mxu0 %v3214_v47 }
 0x229   :  { %v457_v18 = vpop.f32.mrb[0].mxu1  ;;  %v498_v19 = vpop.f32.mrb[4].mxu0 }
 0x22a   :  { %v459_v20 = vpop.f32.mrb[1].mxu1  ;;  %v500_v21 = vpop.f32.mrb[5].mxu0 }
 0x22b   :  { %v461_v22 = vpop.f32.mrb[2].mxu1  ;;  %v502_v23 = vpop.f32.mrb[6].mxu0 }
 0x22c   :  { %v462_v24 = vpop.f32.mrb[3].mxu1  ;;  %v503_v25 = vpop.f32.mrb[7].mxu0  ;;  %v710_v23 = vlaneseq }
 0x22e   :  { %v3402_v24 = vshrl.u32 %v710_v23, 7 }
 0x230   :  { %v716_v23 = vsub.s32 1, %v3402_v24 }
 0x249   :  { %v3354_v26 = vpop.f32.mrb[4].mxu1  ;;  %v3356_v27 = vpop.f32.mrb[8].mxu0 }
 0x24a   :  { %v3358_v28 = vpop.f32.mrb[5].mxu1  ;;  %v3360_v29 = vpop.f32.mrb[9].mxu0 }
 0x24b   :  { %v3362_v30 = vpop.f32.mrb[6].mxu1  ;;  %v3364_v31 = vpop.f32.mrb[10].mxu0 }
 0x24c   :  { %v3366_v32 = vpop.f32.mrb[7].mxu1  ;;  %v3368_v33 = vpop.f32.mrb[11].mxu0 }
 0x24d   :  { %3877 = vst [vmem:[#allocation21_spill] sm:$0xff] %v3366_v32  ;;  %3878 = vst [vmem:[#allocation22_spill] sm:$0xff] %v3368_v33 }
 0x251   :  { %v3370_v34 = vpop.f32.mrb[8].mxu1  ;;  %v3372_v35 = vpop.f32.mrb[12].mxu0 }
 0x252   :  { %3879 = vst [vmem:[#allocation23_spill] sm:$0xff] %v3370_v34  ;;  %3880 = vst [vmem:[#allocation24_spill] sm:$0xff] %v3372_v35  ;;  %v3374_v36 = vpop.f32.mrb[9].mxu1  ;;  %v3376_v37 = vpop.f32.mrb[13].mxu0 }
 0x253   :  { %3881 = vst [vmem:[#allocation25_spill] sm:$0xff] %v3374_v36  ;;  %3882 = vst [vmem:[#allocation26_spill] sm:$0xff] %v3376_v37  ;;  %v3378_v39 = vpop.f32.mrb[10].mxu1  ;;  %v3380_v40 = vpop.f32.mrb[14].mxu0 }
 0x254   :  { %3883 = vst [vmem:[#allocation27_spill] sm:$0xff] %v3378_v39  ;;  %3884 = vst [vmem:[#allocation28_spill] sm:$0xff] %v3380_v40  ;;  %v3382_v41 = vpop.f32.mrb[11].mxu1  ;;  %v3384_v42 = vpop.f32.mrb[15].mxu0 }
 0x255   :  { %3885 = vst [vmem:[#allocation29_spill] sm:$0xff] %v3382_v41  ;;  %3886 = vst [vmem:[#allocation30_spill] sm:$0xff] %v3384_v42  ;;  %v3876_v41 = vsub.s32 3, %v3402_v24 }
 0x259   :  { %v3386_v43 = vpop.f32.mrb[12].mxu1  ;;  %v3388_v44 = vpop.f32.mrb[16].mxu0 }
 0x25a   :  { %3887 = vst [vmem:[#allocation31_spill] sm:$0xff] %v3386_v43  ;;  %3888 = vst [vmem:[#allocation32_spill] sm:$0xff] %v3388_v44  ;;  %v3390_v45 = vpop.f32.mrb[13].mxu1  ;;  %v3392_v48 = vpop.f32.mrb[17].mxu0 }
 0x25b   :  { %3889 = vst [vmem:[#allocation33_spill] sm:$0xff] %v3390_v45  ;;  %3890 = vst [vmem:[#allocation34_spill] sm:$0xff] %v3392_v48  ;;  %v3394_v57 = vpop.f32.mrb[14].mxu1  ;;  %v3396_v2 = vpop.f32.mrb[18].mxu0 }
 0x25c   :  { %3891 = vst [vmem:[#allocation35_spill] sm:$0xff] %v3394_v57  ;;  %3892 = vst [vmem:[#allocation36_spill] sm:$0xff] %v3396_v2  ;;  %v3398_v11 = vpop.f32.mrb[15].mxu1  ;;  %v3400_v22 = vpop.f32.mrb[19].mxu0  ;;  %v3875_v2 = vsub.s32 0, %v3402_v24 }
 0x25d   :  { %3893 = vst [vmem:[#allocation37_spill] sm:$0xff] %v3398_v11  ;;  %3894 = vst [vmem:[#allocation38_spill] sm:$0xff] %v3400_v22  ;;  %v708_v22 = vld [vmem:[%s3869_s6] sm:$0xf] }
 0x261   :  { %v3404_v25 = vpop.f32.mrb[16].mxu1  ;;  %v3406_v38 = vpop.f32.mrb[20].mxu0 }
 0x262   :  { %3895 = vst [vmem:[#allocation39_spill] sm:$0xff] %v3404_v25  ;;  %3896 = vst [vmem:[#allocation40_spill] sm:$0xff] %v3406_v38  ;;  %v3408_v44 = vpop.f32.mrb[17].mxu1  ;;  %v3410_v45 = vpop.f32.mrb[21].mxu0  ;;  %v3419_v25 = vrot.slane %v708_v22, %v3875_v2 }
 0x263   :  { %3897 = vst [vmem:[#allocation41_spill] sm:$0xff] %v3408_v44  ;;  %3898 = vst [vmem:[#allocation42_spill] sm:$0xff] %v3410_v45  ;;  %v606_v48 = vpop.f32.mrb[18].mxu1  ;;  %v677_v43 = vpop.f32.mrb[22].mxu0 }
 0x264   :  { %v607_v57 = vpop.f32.mrb[19].mxu1  ;;  %v678_v42 = vpop.f32.mrb[23].mxu0  ;;  %v3423_v48 = vrot.slane %v708_v22, %v716_v23 }
 0x269   :  { %v931_v38 = vpop.f32.mrb[20].mxu1  ;;  %v972_v44 = vpop.f32.mrb[24].mxu0 }
 0x26a   :  { %v979_v43 = vadd.f32 %v931_v38, %v457_v18  ;;  %v981_v42 = vadd.f32 %v972_v44, %v498_v19  ;;  %v933_v57 = vpop.f32.mrb[21].mxu1  ;;  %v974_v45 = vpop.f32.mrb[25].mxu0  ;;  %v3430_v38 = vrot.slane %v708_v22, %v3876_v41  ;;  %v720_v18 = vsub.s32 2, %v3402_v24 }
 0x26b   :  { %v980_v11 = vadd.f32 %v933_v57, %v459_v20  ;;  %v982_v40 = vadd.f32 %v974_v45, %v500_v21  ;;  %v935_v39 = vpop.f32.mrb[22].mxu1  ;;  %v976_v37 = vpop.f32.mrb[26].mxu0 }
 0x26c   :  { %v983_v36 = vadd.f32 %v979_v43, %v3419_v25  ;;  %v936_v2 = vpop.f32.mrb[23].mxu1  ;;  %v977_v35 = vpop.f32.mrb[27].mxu0  ;;  %v3436_v20 = vrot.slane %v708_v22, %v720_v18 }
 0x26d   :  { %v984_v34 = vadd.f32 %v980_v11, %v3423_v48  ;;  %v986_v19 = vadd.f32 %v982_v40, %v3430_v38 }
 0x26e   :  { %v2385_v33 = vmul.f32 -1.442695, %v983_v36  ;;  %v985_v35 = vadd.f32 %v981_v42, %v3436_v20 }
 0x26f   :  { %v2386_v32 = vmul.f32 -1.442695, %v984_v34  ;;  %v2387_v21 = vmul.f32 -1.442695, %v986_v19 }
 0x270   :  { %2642 = vpow2.f32 %v2385_v33 }
 0x271   :  { %2644 = vpow2.f32 %v2386_v32 }
 0x272   :  { %2646 = vpow2.f32 %v2387_v21  ;;  %v3899_v21 = vmov 0  }
 0x273   :  { %2648 = vtanh.f32 %v985_v35 }
 0x27a   :  { %v2643_v37 = vpop.eup %2642 }
 0x27b   :  { %v2645_v36 = vpop.eup %2644  ;;  %v990_v34 = vadd.f32 1.0, %v2643_v37 }
 0x27c   :  { %v996_v39 = vadd.f32 1.0, %v2645_v36  ;;  %v2647_v33 = vpop.eup %2646 }
 0x27d   :  { %2650 = vrcp.f32 %v990_v34  ;;  %v2649_v44 = vpop.eup %2648  ;;  %v1003_v2 = vadd.f32 1.0, %v2647_v33 }
 0x27e   :  { %2652 = vrcp.f32 %v996_v39 }
 0x27f   :  { %2654 = vrcp.f32 %v1003_v2 }
 0x287   :  { %v2651_v32 = vpop.eup %2650 }
 0x288   :  { %v2653_v45 = vpop.eup %2652  ;;  %v1007_v40 = vmul.f32 %v2651_v32, %v2649_v44 }
 0x289   :  { %v1006_v11 = vmul.f32 0.0, %v2653_v45  ;;  %v2655_v43 = vpop.eup %2654 }
 0x28b   :  { %v3439_v22 = vadd.f32 %v1007_v40, %v1006_v11 }
 0x28d   :  { %2656 = vtanh.f32 %v3439_v22 }
 0x297   :  { %v2657_v42 = vpop.eup %2656 }
 0x298   :  { %v3442_v57 = vmul.f32 %v2657_v42, %v2655_v43 }
 0x29a   :  { %v1019_v19 = vpack.c.bf16 %v3442_v57, %v3442_v57 }
 0x29c   :  { %1053 = vmatmul.mubr.bf16.vlgmr.msra.gmra.mrb[24].mxu1 %v1019_v19  ;;  %1094 = vmatmul.mubr.bf16.vlgmr.msra.gmra.mrb[28].mxu0 %v1019_v19 }
 0x29d   :  { %1145 = vmatpush1.bf16.msra.mxu1 %v3216_v49  ;;  %1186 = vmatpush1.bf16.msra.mxu0 %v3218_v50 }
 0x29e   :  { %1146 = vmatprep.subr.bf16.mxu1 %v3222_v51  ;;  %1187 = vmatprep.subr.bf16.mxu0 %v3224_v52 }
 0x29f   :  { %1176 = vmatprep.mubr.bf16.mxu1 %v3899_v21  ;;  %1217 = vmatprep.mubr.bf16.mxu0 %v3899_v21 }
 0x2a1   :  { %1147 = vmatpush1.bf16.msra.mxu1 %v3228_v53  ;;  %1188 = vmatpush1.bf16.msra.mxu0 %v3230_v54 }
 0x2a2   :  { %1148 = vmatprep.subr.bf16.mxu1 %v3234_v55  ;;  %1189 = vmatprep.subr.bf16.mxu0 %v3236_v56 }
 0x2a5   :  { %1149 = vmatpush1.bf16.msra.mxu1 %v3242_v58  ;;  %1190 = vmatpush1.bf16.msra.mxu0 %v3244_v59 }
 0x2a6   :  { %1150 = vmatprep.subr.bf16.mxu1 %v3248_v60  ;;  %1191 = vmatprep.subr.bf16.mxu0 %v3250_v61 }
 0x2a9   :  { %1151 = vmatpush1.bf16.msra.mxu1 %v3254_v62  ;;  %1192 = vmatpush1.bf16.msra.mxu0 %v3256_v63 }
 0x2aa   :  { %1152 = vmatprep.subr.bf16.mxu1 %v3260_v0  ;;  %1193 = vmatprep.subr.bf16.mxu0 %v3262_v1 }
 0x2ad   :  { %1153 = vmatpush1.bf16.msra.mxu1 %v3268_v3  ;;  %1194 = vmatpush1.bf16.msra.mxu0 %v3270_v4 }
 0x2ae   :  { %1154 = vmatprep.subr.bf16.mxu1 %v3274_v5  ;;  %1195 = vmatprep.subr.bf16.mxu0 %v3276_v6 }
 0x2b1   :  { %1155 = vmatpush1.bf16.msra.mxu1 %v3280_v7  ;;  %1196 = vmatpush1.bf16.msra.mxu0 %v3282_v8 }
 0x2b2   :  { %1156 = vmatprep.subr.bf16.mxu1 %v3286_v9  ;;  %1197 = vmatprep.subr.bf16.mxu0 %v3288_v10 }
 0x2b5   :  { %1157 = vmatpush1.bf16.msra.mxu1 %v3294_v12  ;;  %1198 = vmatpush1.bf16.msra.mxu0 %v3296_v13 }
 0x2b6   :  { %1158 = vmatprep.subr.bf16.mxu1 %v3300_v14  ;;  %1199 = vmatprep.subr.bf16.mxu0 %v3302_v15 }
 0x2b9   :  { %1159 = vmatpush1.bf16.msra.mxu1 %v3306_v16  ;;  %1200 = vmatpush1.bf16.msra.mxu0 %v3308_v17 }
 0x2ba   :  { %1268 = vmatprep.subr.bf16.mxu1 %v3212_v46  ;;  %1309 = vmatprep.subr.bf16.mxu0 %v3214_v47 }
 0x36f   :  { %v1054_v35 = vpop.f32.mrb[24].mxu1  ;;  %v1095_v37 = vpop.f32.mrb[28].mxu0 }
 0x370   :  { %v1102_v36 = vadd.f32 %v1054_v35, %v3354_v26  ;;  %v1104_v34 = vadd.f32 %v1095_v37, %v3356_v27  ;;  %v1056_v39 = vpop.f32.mrb[25].mxu1  ;;  %v1097_v33 = vpop.f32.mrb[29].mxu0 }
 0x371   :  { %v1103_v44 = vadd.f32 %v1056_v39, %v3358_v28  ;;  %v1105_v32 = vadd.f32 %v1097_v33, %v3360_v29  ;;  %v1058_v45 = vpop.f32.mrb[26].mxu1  ;;  %v1099_v40 = vpop.f32.mrb[30].mxu0 }
 0x372   :  { %v1106_v2 = vadd.f32 %v1102_v36, %v3419_v25  ;;  %v1059_v11 = vpop.f32.mrb[27].mxu1  ;;  %v1100_v43 = vpop.f32.mrb[31].mxu0  ;;  %v1108_v35 = vadd.f32 %v1104_v34, %v3436_v20 }
 0x373   :  { %v1107_v42 = vadd.f32 %v1103_v44, %v3423_v48  ;;  %v1109_v26 = vadd.f32 %v1105_v32, %v3430_v38 }
 0x374   :  { %v2388_v19 = vmul.f32 -1.442695, %v1106_v2 }
 0x375   :  { %v2389_v41 = vmul.f32 -1.442695, %v1107_v42  ;;  %v2390_v27 = vmul.f32 -1.442695, %v1109_v26 }
 0x376   :  { %2658 = vpow2.f32 %v2388_v19 }
 0x377   :  { %2660 = vpow2.f32 %v2389_v41 }
 0x378   :  { %2662 = vpow2.f32 %v2390_v27 }
 0x379   :  { %2664 = vtanh.f32 %v1108_v35 }
 0x380   :  { %v2659_v28 = vpop.eup %2658 }
 0x381   :  { %v2661_v37 = vpop.eup %2660  ;;  %v1113_v29 = vadd.f32 1.0, %v2659_v28 }
 0x382   :  { %v1119_v39 = vadd.f32 1.0, %v2661_v37  ;;  %v2663_v36 = vpop.eup %2662  ;;  %v3900_v37 = vld [vmem:[#allocation21_spill] sm:$0xff] }
 0x383   :  { %2666 = vrcp.f32 %v1113_v29  ;;  %v2665_v33 = vpop.eup %2664  ;;  %v1126_v2 = vadd.f32 1.0, %v2663_v36 }
 0x384   :  { %2668 = vrcp.f32 %v1119_v39  ;;  %v3901_v39 = vld [vmem:[#allocation22_spill] sm:$0xff] }
 0x385   :  { %2670 = vrcp.f32 %v1126_v2 }
 0x38d   :  { %v2667_v44 = vpop.eup %2666 }
 0x38e   :  { %v2669_v45 = vpop.eup %2668  ;;  %v1130_v40 = vmul.f32 %v2667_v44, %v2665_v33 }
 0x38f   :  { %v1129_v41 = vmul.f32 %v2669_v45, %v3439_v22  ;;  %v2671_v34 = vpop.eup %2670 }
 0x391   :  { %v3489_v32 = vadd.f32 %v1130_v40, %v1129_v41 }
 0x393   :  { %2672 = vtanh.f32 %v3489_v32 }
 0x39d   :  { %v2673_v11 = vpop.eup %2672 }
 0x39e   :  { %v3492_v43 = vmul.f32 %v2673_v11, %v2671_v34 }
 0x3a0   :  { %v1143_v42 = vpack.c.bf16 %v3492_v43, %v3492_v43 }
 0x3a2   :  { %1177 = vmatmul.mubr.bf16.vlgmr.msra.gmra.mrb[28].mxu1 %v1143_v42  ;;  %1218 = vmatmul.mubr.bf16.vlgmr.msra.gmra.mrb[32].mxu0 %v1143_v42 }
 0x3a3   :  { %1269 = vmatpush1.bf16.msra.mxu1 %v3216_v49  ;;  %1310 = vmatpush1.bf16.msra.mxu0 %v3218_v50 }
 0x3a4   :  { %1270 = vmatprep.subr.bf16.mxu1 %v3222_v51  ;;  %1311 = vmatprep.subr.bf16.mxu0 %v3224_v52 }
 0x3a5   :  { %1300 = vmatprep.mubr.bf16.mxu1 %v3899_v21  ;;  %1341 = vmatprep.mubr.bf16.mxu0 %v3899_v21 }
 0x3a7   :  { %1271 = vmatpush1.bf16.msra.mxu1 %v3228_v53  ;;  %1312 = vmatpush1.bf16.msra.mxu0 %v3230_v54 }
 0x3a8   :  { %1272 = vmatprep.subr.bf16.mxu1 %v3234_v55  ;;  %1313 = vmatprep.subr.bf16.mxu0 %v3236_v56 }
 0x3ab   :  { %1273 = vmatpush1.bf16.msra.mxu1 %v3242_v58  ;;  %1314 = vmatpush1.bf16.msra.mxu0 %v3244_v59 }
 0x3ac   :  { %1274 = vmatprep.subr.bf16.mxu1 %v3248_v60  ;;  %1315 = vmatprep.subr.bf16.mxu0 %v3250_v61 }
 0x3af   :  { %1275 = vmatpush1.bf16.msra.mxu1 %v3254_v62  ;;  %1316 = vmatpush1.bf16.msra.mxu0 %v3256_v63 }
 0x3b0   :  { %1276 = vmatprep.subr.bf16.mxu1 %v3260_v0  ;;  %1317 = vmatprep.subr.bf16.mxu0 %v3262_v1 }
 0x3b3   :  { %1277 = vmatpush1.bf16.msra.mxu1 %v3268_v3  ;;  %1318 = vmatpush1.bf16.msra.mxu0 %v3270_v4 }
 0x3b4   :  { %1278 = vmatprep.subr.bf16.mxu1 %v3274_v5  ;;  %1319 = vmatprep.subr.bf16.mxu0 %v3276_v6 }
 0x3b7   :  { %1279 = vmatpush1.bf16.msra.mxu1 %v3280_v7  ;;  %1320 = vmatpush1.bf16.msra.mxu0 %v3282_v8 }
 0x3b8   :  { %1280 = vmatprep.subr.bf16.mxu1 %v3286_v9  ;;  %1321 = vmatprep.subr.bf16.mxu0 %v3288_v10 }
 0x3bb   :  { %1281 = vmatpush1.bf16.msra.mxu1 %v3294_v12  ;;  %1322 = vmatpush1.bf16.msra.mxu0 %v3296_v13 }
 0x3bc   :  { %1282 = vmatprep.subr.bf16.mxu1 %v3300_v14  ;;  %1323 = vmatprep.subr.bf16.mxu0 %v3302_v15 }
 0x3bf   :  { %1283 = vmatpush1.bf16.msra.mxu1 %v3306_v16  ;;  %1324 = vmatpush1.bf16.msra.mxu0 %v3308_v17 }
 0x3c0   :  { %1392 = vmatprep.subr.bf16.mxu1 %v3212_v46  ;;  %1433 = vmatprep.subr.bf16.mxu0 %v3214_v47 }
 0x475   :  { %v1178_v22 = vpop.f32.mrb[28].mxu1  ;;  %v1219_v19 = vpop.f32.mrb[32].mxu0 }
 0x476   :  { %v1226_v26 = vadd.f32 %v1178_v22, %v3362_v30  ;;  %v1228_v27 = vadd.f32 %v1219_v19, %v3364_v31  ;;  %v1180_v35 = vpop.f32.mrb[29].mxu1  ;;  %v1221_v28 = vpop.f32.mrb[33].mxu0 }
 0x477   :  { %v1227_v29 = vadd.f32 %v1180_v35, %v3900_v37  ;;  %v1229_v36 = vadd.f32 %v1221_v28, %v3901_v39  ;;  %v1182_v33 = vpop.f32.mrb[30].mxu1  ;;  %v1223_v44 = vpop.f32.mrb[34].mxu0 }
 0x478   :  { %v1230_v45 = vadd.f32 %v1226_v26, %v3419_v25  ;;  %v1183_v40 = vpop.f32.mrb[31].mxu1  ;;  %v1224_v2 = vpop.f32.mrb[35].mxu0  ;;  %v1232_v42 = vadd.f32 %v1228_v27, %v3436_v20 }
 0x479   :  { %v1231_v41 = vadd.f32 %v1227_v29, %v3423_v48  ;;  %v1233_v30 = vadd.f32 %v1229_v36, %v3430_v38 }
 0x47a   :  { %v2391_v34 = vmul.f32 -1.442695, %v1230_v45 }
 0x47b   :  { %v2392_v11 = vmul.f32 -1.442695, %v1231_v41  ;;  %v2393_v31 = vmul.f32 -1.442695, %v1233_v30 }
 0x47c   :  { %2674 = vpow2.f32 %v2391_v34 }
 0x47d   :  { %2676 = vpow2.f32 %v2392_v11  ;;  %v3902_v11 = vld [vmem:[#allocation23_spill] sm:$0xff] }
 0x47e   :  { %2678 = vpow2.f32 %v2393_v31  ;;  %v3903_v31 = vld [vmem:[#allocation24_spill] sm:$0xff] }
 0x47f   :  { %2680 = vtanh.f32 %v1232_v42 }
 0x486   :  { %v2675_v22 = vpop.eup %2674 }
 0x487   :  { %v2677_v19 = vpop.eup %2676  ;;  %v1237_v35 = vadd.f32 1.0, %v2675_v22 }
 0x488   :  { %v1243_v28 = vadd.f32 1.0, %v2677_v19  ;;  %v2679_v26 = vpop.eup %2678 }
 0x489   :  { %2682 = vrcp.f32 %v1237_v35  ;;  %v2681_v37 = vpop.eup %2680  ;;  %v1250_v44 = vadd.f32 1.0, %v2679_v26  ;;  %v3904_v35 = vld [vmem:[#allocation25_spill] sm:$0xff]  ;;  %v3905_v26 = vld [vmem:[#allocation26_spill] sm:$0xff] }
 0x48a   :  { %2684 = vrcp.f32 %v1243_v28 }
 0x48b   :  { %2686 = vrcp.f32 %v1250_v44 }
 0x493   :  { %v2683_v29 = vpop.eup %2682 }
 0x494   :  { %v2685_v39 = vpop.eup %2684  ;;  %v1254_v33 = vmul.f32 %v2683_v29, %v2681_v37 }
 0x495   :  { %v1253_v45 = vmul.f32 %v2685_v39, %v3489_v32  ;;  %v2687_v27 = vpop.eup %2686 }
 0x497   :  { %v3539_v36 = vadd.f32 %v1254_v33, %v1253_v45 }
 0x499   :  { %2688 = vtanh.f32 %v3539_v36 }
 0x4a3   :  { %v2689_v40 = vpop.eup %2688 }
 0x4a4   :  { %v3542_v2 = vmul.f32 %v2689_v40, %v2687_v27 }
 0x4a6   :  { %v1267_v41 = vpack.c.bf16 %v3542_v2, %v3542_v2 }
 0x4a8   :  { %1301 = vmatmul.mubr.bf16.vlgmr.msra.gmra.mrb[32].mxu1 %v1267_v41  ;;  %1342 = vmatmul.mubr.bf16.vlgmr.msra.gmra.mrb[36].mxu0 %v1267_v41 }
 0x4a9   :  { %1393 = vmatpush1.bf16.msra.mxu1 %v3216_v49  ;;  %1434 = vmatpush1.bf16.msra.mxu0 %v3218_v50 }
 0x4aa   :  { %1394 = vmatprep.subr.bf16.mxu1 %v3222_v51  ;;  %1435 = vmatprep.subr.bf16.mxu0 %v3224_v52 }
 0x4ab   :  { %1424 = vmatprep.mubr.bf16.mxu1 %v3899_v21  ;;  %1465 = vmatprep.mubr.bf16.mxu0 %v3899_v21 }
 0x4ad   :  { %1395 = vmatpush1.bf16.msra.mxu1 %v3228_v53  ;;  %1436 = vmatpush1.bf16.msra.mxu0 %v3230_v54 }
 0x4ae   :  { %1396 = vmatprep.subr.bf16.mxu1 %v3234_v55  ;;  %1437 = vmatprep.subr.bf16.mxu0 %v3236_v56 }
 0x4b1   :  { %1397 = vmatpush1.bf16.msra.mxu1 %v3242_v58  ;;  %1438 = vmatpush1.bf16.msra.mxu0 %v3244_v59 }
 0x4b2   :  { %1398 = vmatprep.subr.bf16.mxu1 %v3248_v60  ;;  %1439 = vmatprep.subr.bf16.mxu0 %v3250_v61 }
 0x4b5   :  { %1399 = vmatpush1.bf16.msra.mxu1 %v3254_v62  ;;  %1440 = vmatpush1.bf16.msra.mxu0 %v3256_v63 }
 0x4b6   :  { %1400 = vmatprep.subr.bf16.mxu1 %v3260_v0  ;;  %1441 = vmatprep.subr.bf16.mxu0 %v3262_v1 }
 0x4b9   :  { %1401 = vmatpush1.bf16.msra.mxu1 %v3268_v3  ;;  %1442 = vmatpush1.bf16.msra.mxu0 %v3270_v4 }
 0x4ba   :  { %1402 = vmatprep.subr.bf16.mxu1 %v3274_v5  ;;  %1443 = vmatprep.subr.bf16.mxu0 %v3276_v6 }
 0x4bd   :  { %1403 = vmatpush1.bf16.msra.mxu1 %v3280_v7  ;;  %1444 = vmatpush1.bf16.msra.mxu0 %v3282_v8 }
 0x4be   :  { %1404 = vmatprep.subr.bf16.mxu1 %v3286_v9  ;;  %1445 = vmatprep.subr.bf16.mxu0 %v3288_v10 }
 0x4c1   :  { %1405 = vmatpush1.bf16.msra.mxu1 %v3294_v12  ;;  %1446 = vmatpush1.bf16.msra.mxu0 %v3296_v13 }
 0x4c2   :  { %1406 = vmatprep.subr.bf16.mxu1 %v3300_v14  ;;  %1447 = vmatprep.subr.bf16.mxu0 %v3302_v15 }
 0x4c5   :  { %1407 = vmatpush1.bf16.msra.mxu1 %v3306_v16  ;;  %1448 = vmatpush1.bf16.msra.mxu0 %v3308_v17 }
 0x4c6   :  { %1516 = vmatprep.subr.bf16.mxu1 %v3212_v46  ;;  %1557 = vmatprep.subr.bf16.mxu0 %v3214_v47 }
 0x57b   :  { %v1302_v32 = vpop.f32.mrb[32].mxu1  ;;  %v1343_v34 = vpop.f32.mrb[36].mxu0 }
 0x57c   :  { %v1350_v30 = vadd.f32 %v1302_v32, %v3902_v11  ;;  %v1352_v42 = vadd.f32 %v1343_v34, %v3903_v31  ;;  %v1304_v22 = vpop.f32.mrb[33].mxu1  ;;  %v1345_v19 = vpop.f32.mrb[37].mxu0 }
 0x57d   :  { %v1351_v28 = vadd.f32 %v1304_v22, %v3904_v35  ;;  %v1353_v37 = vadd.f32 %v1345_v19, %v3905_v26  ;;  %v1306_v29 = vpop.f32.mrb[34].mxu1  ;;  %v1347_v39 = vpop.f32.mrb[38].mxu0 }
 0x57e   :  { %v1354_v33 = vadd.f32 %v1350_v30, %v3419_v25  ;;  %v1307_v44 = vpop.f32.mrb[35].mxu1  ;;  %v1348_v45 = vpop.f32.mrb[39].mxu0  ;;  %v1356_v11 = vadd.f32 %v1352_v42, %v3436_v20 }
 0x57f   :  { %v1355_v27 = vadd.f32 %v1351_v28, %v3423_v48  ;;  %v1357_v32 = vadd.f32 %v1353_v37, %v3430_v38 }
 0x580   :  { %v2394_v40 = vmul.f32 -1.442695, %v1354_v33 }
 0x581   :  { %v2395_v41 = vmul.f32 -1.442695, %v1355_v27  ;;  %v2396_v34 = vmul.f32 -1.442695, %v1357_v32 }
 0x582   :  { %2690 = vpow2.f32 %v2394_v40 }
 0x583   :  { %2692 = vpow2.f32 %v2395_v41 }
 0x584   :  { %2694 = vpow2.f32 %v2396_v34 }
 0x585   :  { %2696 = vtanh.f32 %v1356_v11 }
 0x58c   :  { %v2691_v31 = vpop.eup %2690 }
 0x58d   :  { %v2693_v22 = vpop.eup %2692  ;;  %v1361_v19 = vadd.f32 1.0, %v2691_v31 }
 0x58e   :  { %v1367_v35 = vadd.f32 1.0, %v2693_v22  ;;  %v2695_v30 = vpop.eup %2694 }
 0x58f   :  { %2698 = vrcp.f32 %v1361_v19  ;;  %v2697_v26 = vpop.eup %2696  ;;  %v1374_v33 = vadd.f32 1.0, %v2695_v30 }
 0x590   :  { %2700 = vrcp.f32 %v1367_v35 }
 0x591   :  { %2702 = vrcp.f32 %v1374_v33 }
 0x599   :  { %v2699_v28 = vpop.eup %2698 }
 0x59a   :  { %v2701_v29 = vpop.eup %2700  ;;  %v1378_v39 = vmul.f32 %v2699_v28, %v2697_v26 }
 0x59b   :  { %v1377_v44 = vmul.f32 %v2701_v29, %v3539_v36  ;;  %v2703_v42 = vpop.eup %2702 }
 0x59d   :  { %v3589_v37 = vadd.f32 %v1378_v39, %v1377_v44 }
 0x59f   :  { %2704 = vtanh.f32 %v3589_v37 }
 0x5a9   :  { %v2705_v45 = vpop.eup %2704 }
 0x5aa   :  { %v3592_v27 = vmul.f32 %v2705_v45, %v2703_v42 }
 0x5ac   :  { %v1391_v40 = vpack.c.bf16 %v3592_v27, %v3592_v27 }
 0x5ae   :  { %1425 = vmatmul.mubr.bf16.vlgmr.msra.gmra.mrb[36].mxu1 %v1391_v40  ;;  %1466 = vmatmul.mubr.bf16.vlgmr.msra.gmra.mrb[40].mxu0 %v1391_v40 }
 0x5af   :  { %1517 = vmatpush1.bf16.msra.mxu1 %v3216_v49  ;;  %1558 = vmatpush1.bf16.msra.mxu0 %v3218_v50 }
 0x5b0   :  { %1518 = vmatprep.subr.bf16.mxu1 %v3222_v51  ;;  %1559 = vmatprep.subr.bf16.mxu0 %v3224_v52  ;;  %v3906_v51 = vld [vmem:[#allocation27_spill] sm:$0xff] }
 0x5b1   :  { %1548 = vmatprep.mubr.bf16.mxu1 %v3899_v21  ;;  %1589 = vmatprep.mubr.bf16.mxu0 %v3899_v21 }
 0x5b3   :  { %1519 = vmatpush1.bf16.msra.mxu1 %v3228_v53  ;;  %1560 = vmatpush1.bf16.msra.mxu0 %v3230_v54  ;;  %v3907_v53 = vld [vmem:[#allocation28_spill] sm:$0xff] }
 0x5b4   :  { %1520 = vmatprep.subr.bf16.mxu1 %v3234_v55  ;;  %1561 = vmatprep.subr.bf16.mxu0 %v3236_v56 }
 0x5b7   :  { %1521 = vmatpush1.bf16.msra.mxu1 %v3242_v58  ;;  %1562 = vmatpush1.bf16.msra.mxu0 %v3244_v59  ;;  %v3908_v58 = vld [vmem:[#allocation29_spill] sm:$0xff] }
 0x5b8   :  { %1522 = vmatprep.subr.bf16.mxu1 %v3248_v60  ;;  %1563 = vmatprep.subr.bf16.mxu0 %v3250_v61  ;;  %v3909_v60 = vld [vmem:[#allocation30_spill] sm:$0xff] }
 0x5bb   :  { %1523 = vmatpush1.bf16.msra.mxu1 %v3254_v62  ;;  %1564 = vmatpush1.bf16.msra.mxu0 %v3256_v63 }
 0x5bc   :  { %1524 = vmatprep.subr.bf16.mxu1 %v3260_v0  ;;  %1565 = vmatprep.subr.bf16.mxu0 %v3262_v1 }
 0x5bf   :  { %1525 = vmatpush1.bf16.msra.mxu1 %v3268_v3  ;;  %1566 = vmatpush1.bf16.msra.mxu0 %v3270_v4 }
 0x5c0   :  { %1526 = vmatprep.subr.bf16.mxu1 %v3274_v5  ;;  %1567 = vmatprep.subr.bf16.mxu0 %v3276_v6 }
 0x5c3   :  { %1527 = vmatpush1.bf16.msra.mxu1 %v3280_v7  ;;  %1568 = vmatpush1.bf16.msra.mxu0 %v3282_v8 }
 0x5c4   :  { %1528 = vmatprep.subr.bf16.mxu1 %v3286_v9  ;;  %1569 = vmatprep.subr.bf16.mxu0 %v3288_v10 }
 0x5c7   :  { %1529 = vmatpush1.bf16.msra.mxu1 %v3294_v12  ;;  %1570 = vmatpush1.bf16.msra.mxu0 %v3296_v13 }
 0x5c8   :  { %1530 = vmatprep.subr.bf16.mxu1 %v3300_v14  ;;  %1571 = vmatprep.subr.bf16.mxu0 %v3302_v15 }
 0x5cb   :  { %1531 = vmatpush1.bf16.msra.mxu1 %v3306_v16  ;;  %1572 = vmatpush1.bf16.msra.mxu0 %v3308_v17 }
 0x5cc   :  { %1640 = vmatprep.subr.bf16.mxu1 %v3212_v46  ;;  %1681 = vmatprep.subr.bf16.mxu0 %v3214_v47 }
 0x681   :  { %v1426_v49 = vpop.f32.mrb[36].mxu1  ;;  %v1467_v50 = vpop.f32.mrb[40].mxu0 }
 0x682   :  { %v1474_v52 = vadd.f32 %v1426_v49, %v3906_v51  ;;  %v1476_v54 = vadd.f32 %v1467_v50, %v3907_v53  ;;  %v1428_v55 = vpop.f32.mrb[37].mxu1  ;;  %v1469_v56 = vpop.f32.mrb[41].mxu0  ;;  %v3646_v51 = vld [vmem:[#allocation12] ss:$16 sps:$4 sm:$0xff]   ;;  %v3655_v53 = vld [vmem:[#allocation12 + $0x2c] ss:$16 sps:$4 sm:$0xff]  }
 0x683   :  { %v1475_v59 = vadd.f32 %v1428_v55, %v3908_v58  ;;  %v1477_v61 = vadd.f32 %v1469_v56, %v3909_v60  ;;  %v1430_v62 = vpop.f32.mrb[38].mxu1  ;;  %v1471_v63 = vpop.f32.mrb[42].mxu0  ;;  %v3663_v55 = vld [vmem:[#allocation12 + $0x28] ss:$16 sps:$4 sm:$0xff]   ;;  %v3666_v56 = vld [vmem:[#allocation12 + $0x44] ss:$16 sps:$4 sm:$0xff]  }
 0x684   :  { %v1478_v0 = vadd.f32 %v1474_v52, %v3419_v25  ;;  %v1431_v1 = vpop.f32.mrb[39].mxu1  ;;  %v1472_v46 = vpop.f32.mrb[43].mxu0  ;;  %v1480_v11 = vadd.f32 %v1476_v54, %v3436_v20  ;;  %v3649_v52 = vld [vmem:[#allocation12 + $0x8] ss:$16 sps:$4 sm:$0xff]   ;;  %v3660_v54 = vld [vmem:[#allocation12 + $0x20] ss:$16 sps:$4 sm:$0xff]  }
 0x685   :  { %v1479_v47 = vadd.f32 %v1475_v59, %v3423_v48  ;;  %v1481_v32 = vadd.f32 %v1477_v61, %v3430_v38  ;;  %v3669_v58 = vld [vmem:[#allocation12 + $0x4c] ss:$16 sps:$4 sm:$0xff]   ;;  %v3672_v59 = vld [vmem:[#allocation12 + $0x40] ss:$16 sps:$4 sm:$0xff]   ;;  %v3675_v60 = vld [vmem:[#allocation12 + $0x48] ss:$16 sps:$4 sm:$0xff]  }
 0x686   :  { %v2397_v36 = vmul.f32 -1.442695, %v1478_v0  ;;  %v3678_v61 = vld [vmem:[#allocation12 + $0x64] ss:$16 sps:$4 sm:$0xff]   ;;  %v3681_v62 = vld [vmem:[#allocation12 + $0x6c] ss:$16 sps:$4 sm:$0xff]  }
 0x687   :  { %v2398_v41 = vmul.f32 -1.442695, %v1479_v47  ;;  %v2399_v34 = vmul.f32 -1.442695, %v1481_v32  ;;  %v3684_v63 = vld [vmem:[#allocation12 + $0x60] ss:$16 sps:$4 sm:$0xff]  }
 0x688   :  { %2706 = vpow2.f32 %v2397_v36  ;;  %v3687_v0 = vld [vmem:[#allocation12 + $0x68] ss:$16 sps:$4 sm:$0xff]   ;;  %v3690_v1 = vld [vmem:[#allocation12 + $0x84] ss:$16 sps:$4 sm:$0xff]   ;;  %v3693_v46 = vld [vmem:[#allocation12 + $0x8c] ss:$16 sps:$4 sm:$0xff]  }
 0x689   :  { %2708 = vpow2.f32 %v2398_v41  ;;  %v3912_v47 = vld [vmem:[#allocation33_spill] sm:$0xff]  ;;  %v3913_v36 = vld [vmem:[#allocation34_spill] sm:$0xff] }
 0x68a   :  { %2710 = vpow2.f32 %v2399_v34 }
 0x68b   :  { %2712 = vtanh.f32 %v1480_v11 }
 0x692   :  { %v2707_v31 = vpop.eup %2706 }
 0x693   :  { %v2709_v22 = vpop.eup %2708  ;;  %v1485_v19 = vadd.f32 1.0, %v2707_v31 }
 0x694   :  { %v1491_v35 = vadd.f32 1.0, %v2709_v22  ;;  %v2711_v30 = vpop.eup %2710 }
 0x695   :  { %2714 = vrcp.f32 %v1485_v19  ;;  %v2713_v26 = vpop.eup %2712  ;;  %v1498_v33 = vadd.f32 1.0, %v2711_v30 }
 0x696   :  { %2716 = vrcp.f32 %v1491_v35 }
 0x697   :  { %2718 = vrcp.f32 %v1498_v33 }
 0x69f   :  { %v2715_v28 = vpop.eup %2714 }
 0x6a0   :  { %v2717_v29 = vpop.eup %2716  ;;  %v1502_v39 = vmul.f32 %v2715_v28, %v2713_v26 }
 0x6a1   :  { %v1501_v44 = vmul.f32 %v2717_v29, %v3589_v37  ;;  %v2719_v45 = vpop.eup %2718  ;;  %v3652_v37 = vld [vmem:[#allocation12 + $0x24] ss:$16 sps:$4 sm:$0xff]  }
 0x6a3   :  { %v3639_v42 = vadd.f32 %v1502_v39, %v1501_v44 }
 0x6a5   :  { %2720 = vtanh.f32 %v3639_v42 }
 0x6af   :  { %v2721_v40 = vpop.eup %2720 }
 0x6b0   :  { %v3642_v49 = vmul.f32 %v2721_v40, %v2719_v45 }
 0x6b2   :  { %v1515_v50 = vpack.c.bf16 %v3642_v49, %v3642_v49 }
 0x6b4   :  { %1549 = vmatmul.mubr.bf16.vlgmr.msra.gmra.mrb[40].mxu1 %v1515_v50  ;;  %1590 = vmatmul.mubr.bf16.vlgmr.msra.gmra.mrb[44].mxu0 %v1515_v50 }
 0x6b5   :  { %1641 = vmatpush1.bf16.msra.mxu1 %v3646_v51  ;;  %1682 = vmatpush1.bf16.msra.mxu0 %v3649_v52 }
 0x6b6   :  { %1642 = vmatprep.subr.bf16.mxu1 %v3652_v37  ;;  %1683 = vmatprep.subr.bf16.mxu0 %v3655_v53 }
 0x6b7   :  { %1672 = vmatprep.mubr.bf16.mxu1 %v3899_v21  ;;  %1713 = vmatprep.mubr.bf16.mxu0 %v3899_v21 }
 0x6b9   :  { %1643 = vmatpush1.bf16.msra.mxu1 %v3660_v54  ;;  %1684 = vmatpush1.bf16.msra.mxu0 %v3663_v55 }
 0x6ba   :  { %1644 = vmatprep.subr.bf16.mxu1 %v3666_v56  ;;  %1685 = vmatprep.subr.bf16.mxu0 %v3669_v58 }
 0x6bd   :  { %1645 = vmatpush1.bf16.msra.mxu1 %v3672_v59  ;;  %1686 = vmatpush1.bf16.msra.mxu0 %v3675_v60 }
 0x6be   :  { %1646 = vmatprep.subr.bf16.mxu1 %v3678_v61  ;;  %1687 = vmatprep.subr.bf16.mxu0 %v3681_v62 }
 0x6c1   :  { %1647 = vmatpush1.bf16.msra.mxu1 %v3684_v63  ;;  %1688 = vmatpush1.bf16.msra.mxu0 %v3687_v0 }
 0x6c2   :  { %1648 = vmatprep.subr.bf16.mxu1 %v3690_v1  ;;  %1689 = vmatprep.subr.bf16.mxu0 %v3693_v46 }
 0x6c5   :  { %1649 = vmatpush1.bf16.msra.mxu1 %v3268_v3  ;;  %1690 = vmatpush1.bf16.msra.mxu0 %v3270_v4  ;;  %v2786_v3 = vld [vmem:[#allocation12 + $0x4] ss:$16 sps:$4 sm:$0xff]   ;;  %v2787_v4 = vld [vmem:[#allocation12 + $0xc] ss:$16 sps:$4 sm:$0xff]  }
 0x6c6   :  { %1650 = vmatprep.subr.bf16.mxu1 %v3274_v5  ;;  %1691 = vmatprep.subr.bf16.mxu0 %v3276_v6 }
 0x6c9   :  { %1651 = vmatpush1.bf16.msra.mxu1 %v3280_v7  ;;  %1692 = vmatpush1.bf16.msra.mxu0 %v3282_v8  ;;  %v3910_v7 = vld [vmem:[#allocation31_spill] sm:$0xff] }
 0x6ca   :  { %1652 = vmatprep.subr.bf16.mxu1 %v3286_v9  ;;  %1693 = vmatprep.subr.bf16.mxu0 %v3288_v10  ;;  %v3911_v9 = vld [vmem:[#allocation32_spill] sm:$0xff] }
 0x6cd   :  { %1653 = vmatpush1.bf16.msra.mxu1 %v3294_v12  ;;  %1694 = vmatpush1.bf16.msra.mxu0 %v3296_v13 }
 0x6ce   :  { %1654 = vmatprep.subr.bf16.mxu1 %v3300_v14  ;;  %1695 = vmatprep.subr.bf16.mxu0 %v3302_v15 }
 0x6d1   :  { %1655 = vmatpush1.bf16.msra.mxu1 %v3306_v16  ;;  %1696 = vmatpush1.bf16.msra.mxu0 %v3308_v17 }
 0x6d2   :  { %1764 = vmatprep.subr.bf16.mxu1 %v2786_v3  ;;  %1805 = vmatprep.subr.bf16.mxu0 %v2787_v4 }
 0x787   :  { %v1550_v5 = vpop.f32.mrb[40].mxu1  ;;  %v1591_v6 = vpop.f32.mrb[44].mxu0 }
 0x788   :  { %v1598_v8 = vadd.f32 %v1550_v5, %v3910_v7  ;;  %v1600_v10 = vadd.f32 %v1591_v6, %v3911_v9  ;;  %v1552_v12 = vpop.f32.mrb[41].mxu1  ;;  %v1593_v13 = vpop.f32.mrb[45].mxu0 }
 0x789   :  { %v1599_v14 = vadd.f32 %v1552_v12, %v3912_v47  ;;  %v1601_v15 = vadd.f32 %v1593_v13, %v3913_v36  ;;  %v1554_v41 = vpop.f32.mrb[42].mxu1  ;;  %v1595_v16 = vpop.f32.mrb[46].mxu0  ;;  %v3914_v12 = vld [vmem:[#allocation35_spill] sm:$0xff]  ;;  %v3915_v47 = vld [vmem:[#allocation36_spill] sm:$0xff] }
 0x78a   :  { %v1602_v17 = vadd.f32 %v1598_v8, %v3419_v25  ;;  %v1555_v32 = vpop.f32.mrb[43].mxu1  ;;  %v1596_v34 = vpop.f32.mrb[47].mxu0  ;;  %v1604_v30 = vadd.f32 %v1600_v10, %v3436_v20  ;;  %v3916_v41 = vld [vmem:[#allocation37_spill] sm:$0xff] }
 0x78b   :  { %v1603_v11 = vadd.f32 %v1599_v14, %v3423_v48  ;;  %v1605_v19 = vadd.f32 %v1601_v15, %v3430_v38 }
 0x78c   :  { %v2400_v31 = vmul.f32 -1.442695, %v1602_v17  ;;  %v3917_v17 = vld [vmem:[#allocation38_spill] sm:$0xff] }
 0x78d   :  { %v2401_v22 = vmul.f32 -1.442695, %v1603_v11  ;;  %v2402_v35 = vmul.f32 -1.442695, %v1605_v19 }
 0x78e   :  { %2722 = vpow2.f32 %v2400_v31 }
 0x78f   :  { %2724 = vpow2.f32 %v2401_v22 }
 0x790   :  { %2726 = vpow2.f32 %v2402_v35 }
 0x791   :  { %2728 = vtanh.f32 %v1604_v30 }
 0x798   :  { %v2723_v26 = vpop.eup %2722 }
 0x799   :  { %v2725_v28 = vpop.eup %2724  ;;  %v1609_v29 = vadd.f32 1.0, %v2723_v26 }
 0x79a   :  { %v1615_v39 = vadd.f32 1.0, %v2725_v28  ;;  %v2727_v33 = vpop.eup %2726 }
 0x79b   :  { %2730 = vrcp.f32 %v1609_v29  ;;  %v2729_v44 = vpop.eup %2728  ;;  %v1622_v3 = vadd.f32 1.0, %v2727_v33 }
 0x79c   :  { %2732 = vrcp.f32 %v1615_v39 }
 0x79d   :  { %2734 = vrcp.f32 %v1622_v3 }
 0x7a5   :  { %v2731_v45 = vpop.eup %2730 }
 0x7a6   :  { %v2733_v40 = vpop.eup %2732  ;;  %v1626_v50 = vmul.f32 %v2731_v45, %v2729_v44 }
 0x7a7   :  { %v1625_v4 = vmul.f32 %v2733_v40, %v3639_v42  ;;  %v2735_v6 = vpop.eup %2734  ;;  %v2788_v42 = vld [vmem:[#allocation12 + $0x80] ss:$16 sps:$4 sm:$0xff]  }
 0x7a9   :  { %v3719_v5 = vadd.f32 %v1626_v50, %v1625_v4 }
 0x7ab   :  { %2736 = vtanh.f32 %v3719_v5 }
 0x7b5   :  { %v2737_v7 = vpop.eup %2736 }
 0x7b6   :  { %v3722_v8 = vmul.f32 %v2737_v7, %v2735_v6 }
 0x7b8   :  { %v1639_v9 = vpack.c.bf16 %v3722_v8, %v3722_v8 }
 0x7ba   :  { %1673 = vmatmul.mubr.bf16.vlgmr.msra.gmra.mrb[44].mxu1 %v1639_v9  ;;  %1714 = vmatmul.mubr.bf16.vlgmr.msra.gmra.mrb[48].mxu0 %v1639_v9 }
 0x7bb   :  { %1765 = vmatpush1.bf16.msra.mxu1 %v3646_v51  ;;  %1806 = vmatpush1.bf16.msra.mxu0 %v3649_v52  ;;  %v2789_v51 = vld [vmem:[#allocation12 + $0x88] ss:$16 sps:$4 sm:$0xff]   ;;  %v2790_v52 = vld [vmem:[#allocation12 + $0xa4] ss:$16 sps:$4 sm:$0xff]  }
 0x7bc   :  { %1766 = vmatprep.subr.bf16.mxu1 %v3652_v37  ;;  %1807 = vmatprep.subr.bf16.mxu0 %v3655_v53  ;;  %v2791_v37 = vld [vmem:[#allocation12 + $0xac] ss:$16 sps:$4 sm:$0xff]   ;;  %v2792_v53 = vld [vmem:[#allocation12 + $0xa0] ss:$16 sps:$4 sm:$0xff]  }
 0x7bd   :  { %1796 = vmatprep.mubr.bf16.mxu1 %v3899_v21  ;;  %1837 = vmatprep.mubr.bf16.mxu0 %v3899_v21 }
 0x7bf   :  { %1767 = vmatpush1.bf16.msra.mxu1 %v3660_v54  ;;  %1808 = vmatpush1.bf16.msra.mxu0 %v3663_v55  ;;  %v2793_v54 = vld [vmem:[#allocation12 + $0xa8] ss:$16 sps:$4 sm:$0xff]   ;;  %v2794_v55 = vld [vmem:[#allocation12 + $0xc4] ss:$16 sps:$4 sm:$0xff]  }
 0x7c0   :  { %1768 = vmatprep.subr.bf16.mxu1 %v3666_v56  ;;  %1809 = vmatprep.subr.bf16.mxu0 %v3669_v58  ;;  %v2795_v56 = vld [vmem:[#allocation12 + $0xcc] ss:$16 sps:$4 sm:$0xff]   ;;  %v2796_v58 = vld [vmem:[#allocation12 + $0xc0] ss:$16 sps:$4 sm:$0xff]  }
 0x7c3   :  { %1769 = vmatpush1.bf16.msra.mxu1 %v3672_v59  ;;  %1810 = vmatpush1.bf16.msra.mxu0 %v3675_v60  ;;  %v2797_v59 = vld [vmem:[#allocation12 + $0xc8] ss:$16 sps:$4 sm:$0xff]   ;;  %v2798_v60 = vld [vmem:[#allocation12 + $0xe4] ss:$16 sps:$4 sm:$0xff]  }
 0x7c4   :  { %1770 = vmatprep.subr.bf16.mxu1 %v3678_v61  ;;  %1811 = vmatprep.subr.bf16.mxu0 %v3681_v62  ;;  %v2799_v61 = vld [vmem:[#allocation12 + $0xec] ss:$16 sps:$4 sm:$0xff]   ;;  %v2800_v62 = vld [vmem:[#allocation12 + $0xe0] ss:$16 sps:$4 sm:$0xff]  }
 0x7c7   :  { %1771 = vmatpush1.bf16.msra.mxu1 %v3684_v63  ;;  %1812 = vmatpush1.bf16.msra.mxu0 %v3687_v0  ;;  %v2801_v63 = vld [vmem:[#allocation12 + $0xe8] ss:$16 sps:$4 sm:$0xff]   ;;  %v2596_v0 = vld [vmem:[#allocation13 + $0x4] ss:$16 sps:$4 sm:$0xff]  }
 0x7c8   :  { %1772 = vmatprep.subr.bf16.mxu1 %v3690_v1  ;;  %1813 = vmatprep.subr.bf16.mxu0 %v3693_v46  ;;  %v3744_v1 = vld [vmem:[#allocation13 + $0xc] ss:$16 sps:$4 sm:$0xff]  }
 0x7cb   :  { %1773 = vmatpush1.bf16.msra.mxu1 %v2788_v42  ;;  %1814 = vmatpush1.bf16.msra.mxu0 %v2789_v51 }
 0x7cc   :  { %1774 = vmatprep.subr.bf16.mxu1 %v2790_v52  ;;  %1815 = vmatprep.subr.bf16.mxu0 %v2791_v37 }
 0x7cf   :  { %1775 = vmatpush1.bf16.msra.mxu1 %v2792_v53  ;;  %1816 = vmatpush1.bf16.msra.mxu0 %v2793_v54  ;;  %v2594_v54 = vld [vmem:[#allocation13] ss:$16 sps:$4 sm:$0xff]  }
 0x7d0   :  { %1776 = vmatprep.subr.bf16.mxu1 %v2794_v55  ;;  %1817 = vmatprep.subr.bf16.mxu0 %v2795_v56  ;;  %v3761_v55 = vld [vmem:[#allocation13 + $0x8] ss:$16 sps:$4 sm:$0xff]  }
 0x7d3   :  { %1777 = vmatpush1.bf16.msra.mxu1 %v2796_v58  ;;  %1818 = vmatpush1.bf16.msra.mxu0 %v2797_v59  ;;  %v2602_v58 = vld [vmem:[#allocation13 + $0x24] ss:$16 sps:$4 sm:$0xff]   ;;  %v3765_v59 = vld [vmem:[#allocation13 + $0x2c] ss:$16 sps:$4 sm:$0xff]  }
 0x7d4   :  { %1778 = vmatprep.subr.bf16.mxu1 %v2798_v60  ;;  %1819 = vmatprep.subr.bf16.mxu0 %v2799_v61  ;;  %v3768_v60 = vld [vmem:[#allocation13 + $0x28] ss:$16 sps:$4 sm:$0xff]   ;;  %v2608_v61 = vld [vmem:[#allocation13 + $0x44] ss:$16 sps:$4 sm:$0xff]  }
 0x7d7   :  { %1779 = vmatpush1.bf16.msra.mxu1 %v2800_v62  ;;  %1820 = vmatpush1.bf16.msra.mxu0 %v2801_v63  ;;  %v2611_v62 = vld [vmem:[#allocation13 + $0x4c] ss:$16 sps:$4 sm:$0xff]   ;;  %v2606_v63 = vld [vmem:[#allocation13 + $0x40] ss:$16 sps:$4 sm:$0xff]  }
 0x7d8   :  { %2106 = vmatprep.subr.bf16.mxu1 %v2596_v0  ;;  %2179 = vmatprep.subr.bf16.mxu0 %v3744_v1  ;;  %v2609_v0 = vld [vmem:[#allocation13 + $0x48] ss:$16 sps:$4 sm:$0xff]  }
 0x88d   :  { %v1674_v46 = vpop.f32.mrb[44].mxu1  ;;  %v1715_v10 = vpop.f32.mrb[48].mxu0 }
 0x88e   :  { %v1722_v13 = vadd.f32 %v1674_v46, %v3914_v12  ;;  %v1724_v14 = vadd.f32 %v1715_v10, %v3915_v47  ;;  %v1676_v36 = vpop.f32.mrb[45].mxu1  ;;  %v1717_v15 = vpop.f32.mrb[49].mxu0  ;;  %v2614_v46 = vld [vmem:[#allocation13 + $0x64] ss:$16 sps:$4 sm:$0xff]   ;;  %v2617_v10 = vld [vmem:[#allocation13 + $0x6c] ss:$16 sps:$4 sm:$0xff]  }
 0x88f   :  { %v1723_v16 = vadd.f32 %v1676_v36, %v3916_v41  ;;  %v1725_v32 = vadd.f32 %v1717_v15, %v3917_v17  ;;  %v1678_v34 = vpop.f32.mrb[46].mxu1  ;;  %v1719_v11 = vpop.f32.mrb[50].mxu0  ;;  %v2612_v12 = vld [vmem:[#allocation13 + $0x60] ss:$16 sps:$4 sm:$0xff]   ;;  %v2620_v47 = vld [vmem:[#allocation13 + $0x84] ss:$16 sps:$4 sm:$0xff]  }
 0x890   :  { %v1726_v31 = vadd.f32 %v1722_v13, %v3419_v25  ;;  %v1679_v22 = vpop.f32.mrb[47].mxu1  ;;  %v1720_v19 = vpop.f32.mrb[51].mxu0  ;;  %v1728_v39 = vadd.f32 %v1724_v14, %v3436_v20  ;;  %v2615_v13 = vld [vmem:[#allocation13 + $0x68] ss:$16 sps:$4 sm:$0xff]   ;;  %v2623_v14 = vld [vmem:[#allocation13 + $0x8c] ss:$16 sps:$4 sm:$0xff]  }
 0x891   :  { %v1727_v35 = vadd.f32 %v1723_v16, %v3423_v48  ;;  %v1729_v28 = vadd.f32 %v1725_v32, %v3430_v38  ;;  %v2618_v36 = vld [vmem:[#allocation13 + $0x80] ss:$16 sps:$4 sm:$0xff]   ;;  %v2621_v15 = vld [vmem:[#allocation13 + $0x88] ss:$16 sps:$4 sm:$0xff]   ;;  %v2626_v41 = vld [vmem:[#allocation13 + $0xa4] ss:$16 sps:$4 sm:$0xff]  }
 0x892   :  { %v2403_v30 = vmul.f32 -1.442695, %v1726_v31  ;;  %v2629_v16 = vld [vmem:[#allocation13 + $0xac] ss:$16 sps:$4 sm:$0xff]   ;;  %v2624_v17 = vld [vmem:[#allocation13 + $0xa0] ss:$16 sps:$4 sm:$0xff]  }
 0x893   :  { %v2404_v26 = vmul.f32 -1.442695, %v1727_v35  ;;  %v2405_v29 = vmul.f32 -1.442695, %v1729_v28  ;;  %v2627_v32 = vld [vmem:[#allocation13 + $0xa8] ss:$16 sps:$4 sm:$0xff]   ;;  %v1888_v28 = vpack.c.bf16 %v3492_v43, %v3442_v57  ;;  %v1890_v57 = vpack.c.bf16 %v3722_v8, %v3642_v49 }
 0x894   :  { %2738 = vpow2.f32 %v2403_v30  ;;  %v2632_v34 = vld [vmem:[#allocation13 + $0xc4] ss:$16 sps:$4 sm:$0xff]   ;;  %v2635_v11 = vld [vmem:[#allocation13 + $0xcc] ss:$16 sps:$4 sm:$0xff]   ;;  %v2630_v31 = vld [vmem:[#allocation13 + $0xc0] ss:$16 sps:$4 sm:$0xff]  }
 0x895   :  { %2740 = vpow2.f32 %v2404_v26  ;;  %v2633_v22 = vld [vmem:[#allocation13 + $0xc8] ss:$16 sps:$4 sm:$0xff]   ;;  %v2638_v19 = vld [vmem:[#allocation13 + $0xe4] ss:$16 sps:$4 sm:$0xff]   ;;  %v2641_v35 = vld [vmem:[#allocation13 + $0xec] ss:$16 sps:$4 sm:$0xff]  }
 0x896   :  { %2742 = vpow2.f32 %v2405_v29  ;;  %v2636_v30 = vld [vmem:[#allocation13 + $0xe0] ss:$16 sps:$4 sm:$0xff]   ;;  %v2639_v26 = vld [vmem:[#allocation13 + $0xe8] ss:$16 sps:$4 sm:$0xff]   ;;  %v1889_v29 = vpack.c.bf16 %v3592_v27, %v3542_v2 }
 0x897   :  { %2744 = vtanh.f32 %v1728_v39  ;;  %v3918_v27 = vld [vmem:[#allocation39_spill] sm:$0xff]  ;;  %v3919_v39 = vld [vmem:[#allocation40_spill] sm:$0xff] }
 0x89e   :  { %v2739_v33 = vpop.eup %2738 }
 0x89f   :  { %v2741_v44 = vpop.eup %2740  ;;  %v1733_v45 = vadd.f32 1.0, %v2739_v33 }
 0x8a0   :  { %v1739_v40 = vadd.f32 1.0, %v2741_v44  ;;  %v2743_v50 = vpop.eup %2742  ;;  %v3920_v44 = vld [vmem:[#allocation41_spill] sm:$0xff] }
 0x8a1   :  { %2746 = vrcp.f32 %v1733_v45  ;;  %v2745_v3 = vpop.eup %2744  ;;  %v1746_v9 = vadd.f32 1.0, %v2743_v50 }
 0x8a2   :  { %2748 = vrcp.f32 %v1739_v40  ;;  %v3921_v40 = vld [vmem:[#allocation42_spill] sm:$0xff] }
 0x8a3   :  { %2750 = vrcp.f32 %v1746_v9 }
 0x8ab   :  { %v2747_v4 = vpop.eup %2746 }
 0x8ac   :  { %v2749_v6 = vpop.eup %2748  ;;  %v1750_v7 = vmul.f32 %v2747_v4, %v2745_v3 }
 0x8ad   :  { %v1749_v42 = vmul.f32 %v2749_v6, %v3719_v5  ;;  %v2751_v52 = vpop.eup %2750  ;;  %v2600_v5 = vld [vmem:[#allocation13 + $0x20] ss:$16 sps:$4 sm:$0xff]  }
 0x8af   :  { %v3756_v51 = vadd.f32 %v1750_v7, %v1749_v42 }
 0x8b1   :  { %2752 = vtanh.f32 %v3756_v51 }
 0x8bb   :  { %v2753_v37 = vpop.eup %2752 }
 0x8bc   :  { %v3759_v53 = vmul.f32 %v2753_v37, %v2751_v52 }
 0x8be   :  { %v1763_v56 = vpack.c.bf16 %v3759_v53, %v3759_v53 }
 0x8c0   :  { %1797 = vmatmul.mubr.bf16.vlgmr.msra.gmra.mrb[48].mxu1 %v1763_v56  ;;  %1838 = vmatmul.mubr.bf16.vlgmr.msra.gmra.mrb[52].mxu0 %v1763_v56 }
 0x8c1   :  { %2107 = vmatpush1.bf16.msra.mxu1 %v2594_v54  ;;  %2180 = vmatpush1.bf16.msra.mxu0 %v3761_v55 }
 0x8c2   :  { %2108 = vmatprep.subr.bf16.mxu1 %v2602_v58  ;;  %2181 = vmatprep.subr.bf16.mxu0 %v3765_v59 }
 0x8c3   :  { %2138 = vmatprep.mubr.bf16.mxu1 %v3899_v21  ;;  %2211 = vmatprep.mubr.bf16.mxu0 %v3899_v21 }
 0x8c5   :  { %2109 = vmatpush1.bf16.msra.mxu1 %v2600_v5  ;;  %2182 = vmatpush1.bf16.msra.mxu0 %v3768_v60 }
 0x8c6   :  { %2110 = vmatprep.subr.bf16.mxu1 %v2608_v61  ;;  %2183 = vmatprep.subr.bf16.mxu0 %v2611_v62 }
 0x8c9   :  { %2111 = vmatpush1.bf16.msra.mxu1 %v2606_v63  ;;  %2184 = vmatpush1.bf16.msra.mxu0 %v2609_v0 }
 0x8ca   :  { %2112 = vmatprep.subr.bf16.mxu1 %v2614_v46  ;;  %2185 = vmatprep.subr.bf16.mxu0 %v2617_v10  ;;  %v3923_v46 = vsub.s32 3, %v3402_v24 }
 0x8cd   :  { %2113 = vmatpush1.bf16.msra.mxu1 %v2612_v12  ;;  %2186 = vmatpush1.bf16.msra.mxu0 %v2615_v13 }
 0x8ce   :  { %2114 = vmatprep.subr.bf16.mxu1 %v2620_v47  ;;  %2187 = vmatprep.subr.bf16.mxu0 %v2623_v14 }
 0x8d1   :  { %2115 = vmatpush1.bf16.msra.mxu1 %v2618_v36  ;;  %2188 = vmatpush1.bf16.msra.mxu0 %v2621_v15 }
 0x8d2   :  { %2116 = vmatprep.subr.bf16.mxu1 %v2626_v41  ;;  %2189 = vmatprep.subr.bf16.mxu0 %v2629_v16 }
 0x8d5   :  { %2117 = vmatpush1.bf16.msra.mxu1 %v2624_v17  ;;  %2190 = vmatpush1.bf16.msra.mxu0 %v2627_v32 }
 0x8d6   :  { %2118 = vmatprep.subr.bf16.mxu1 %v2632_v34  ;;  %2191 = vmatprep.subr.bf16.mxu0 %v2635_v11 }
 0x8d9   :  { %2119 = vmatpush1.bf16.msra.mxu1 %v2630_v31  ;;  %2192 = vmatpush1.bf16.msra.mxu0 %v2633_v22 }
 0x8da   :  { %2120 = vmatprep.subr.bf16.mxu1 %v2638_v19  ;;  %2193 = vmatprep.subr.bf16.mxu0 %v2641_v35 }
 0x8dd   :  { %2121 = vmatpush1.bf16.msra.mxu1 %v2636_v30  ;;  %2194 = vmatpush1.bf16.msra.mxu0 %v2639_v26 }
 0x8de   :  { %2458 = vmatprep.subr.bf16.mxu1 %v3744_v1 }
 0x8e0   :  { %2139 = vmatmul.mubr.bf16.vlgmr.msra.gmra.mrb[52].mxu1 %v1888_v28  ;;  %2212 = vmatmul.mubr.bf16.vlgmr.msra.gmra.mrb[56].mxu0 %v1888_v28 }
 0x8e1   :  { %2148 = vmatprep.mubr.bf16.mxu1 %v3899_v21  ;;  %2221 = vmatprep.mubr.bf16.mxu0 %v3899_v21 }
 0x8e2   :  { %2466 = vmatpush1.bf16.msra.mxu1 %v3761_v55 }
 0x8e3   :  { %2459 = vmatprep.subr.bf16.mxu1 %v3765_v59 }
 0x8e6   :  { %2467 = vmatpush1.bf16.msra.mxu1 %v3768_v60 }
 0x8e7   :  { %2460 = vmatprep.subr.bf16.mxu1 %v2611_v62  ;;  %v3922_v62 = vsub.s32 0, %v3402_v24 }
 0x8e8   :  { %2149 = vmatmul.mubr.bf16.gmra.mrb[56].mxu1 %v1889_v29  ;;  %2222 = vmatmul.mubr.bf16.gmra.mrb[60].mxu0 %v1889_v29 }
 0x8e9   :  { %2158 = vmatprep.mubr.bf16.mxu1 %v3899_v21  ;;  %2231 = vmatprep.mubr.bf16.mxu0 %v3899_v21 }
 0x8ea   :  { %2468 = vmatpush1.bf16.msra.mxu1 %v2609_v0 }
 0x8eb   :  { %2461 = vmatprep.subr.bf16.mxu1 %v2617_v10 }
 0x8ee   :  { %2469 = vmatpush1.bf16.msra.mxu1 %v2615_v13 }
 0x8ef   :  { %2462 = vmatprep.subr.bf16.mxu1 %v2623_v14 }
 0x8f0   :  { %2159 = vmatmul.mubr.bf16.gmra.mrb[60].mxu1 %v1890_v57  ;;  %2232 = vmatmul.mubr.bf16.gmra.mrb[64].mxu0 %v1890_v57 }
 0x8f1   :  { %2168 = vmatprep.mubr.bf16.mxu1 %v3899_v21 }
 0x8f2   :  { %2470 = vmatpush1.bf16.msra.mxu1 %v2621_v15 }
 0x8f3   :  { %2463 = vmatprep.subr.bf16.mxu1 %v2629_v16 }
 0x8f6   :  { %2471 = vmatpush1.bf16.msra.mxu1 %v2627_v32 }
 0x8f7   :  { %2464 = vmatprep.subr.bf16.mxu1 %v2635_v11 }
 0x8fa   :  { %2472 = vmatpush1.bf16.msra.mxu1 %v2633_v22 }
 0x8fb   :  { %2465 = vmatprep.subr.bf16.mxu1 %v2641_v35 }
 0x8fe   :  { %2473 = vmatpush1.bf16.msra.mxu1 %v2639_v26 }
 0x993   :  { %v1798_v43 = vpop.f32.mrb[48].mxu1  ;;  %v1839_v2 = vpop.f32.mrb[52].mxu0 }
 0x994   :  { %v1846_v1 = vadd.f32 %v1798_v43, %v3918_v27  ;;  %v1848_v33 = vadd.f32 %v1839_v2, %v3919_v39  ;;  %v1800_v49 = vpop.f32.mrb[49].mxu1  ;;  %v1841_v8 = vpop.f32.mrb[53].mxu0 }
 0x995   :  { %v1847_v45 = vadd.f32 %v1800_v49, %v3920_v44  ;;  %v1849_v50 = vadd.f32 %v1841_v8, %v3921_v40  ;;  %v1802_v3 = vpop.f32.mrb[50].mxu1  ;;  %v1843_v4 = vpop.f32.mrb[54].mxu0 }
 0x996   :  { %v1850_v6 = vadd.f32 %v1846_v1, %v3419_v25  ;;  %v1803_v7 = vpop.f32.mrb[51].mxu1  ;;  %v1844_v9 = vpop.f32.mrb[55].mxu0  ;;  %v1852_v56 = vadd.f32 %v1848_v33, %v3436_v20  ;;  %v1924_v25 = vld [vmem:[%s3871_s8] sm:$0xf]  ;;  %s2979_s8 = smov [#allocation15]  }
 0x997   :  { %v1851_v42 = vadd.f32 %v1847_v45, %v3423_v48  ;;  %v1853_v54 = vadd.f32 %v1849_v50, %v3430_v38  ;;  %v3802_v38 = vrot.slane %v1924_v25, %v3922_v62  ;;  %v3806_v20 = vrot.slane %v1924_v25, %v720_v18  ;;  %s2289_s23 = sshll.u32 %s2979_s8, 4  ;;  %s2290_s23 = int_to_ptr.vmem [resolvable:$true] %s2289_s23 }
 0x998   :  { %v2406_v52 = vmul.f32 -1.442695, %v1850_v6  ;;  %v3810_v0 = vrot.slane %v1924_v25, %v716_v23  ;;  %v3814_v10 = vrot.slane %v1924_v25, %v3923_v46  ;;  %s2934_s25 = scalar_lea.vmem %s2290_s23, 4096  ;;  %p2939_p7 = scmp.lt.s32.totalorder %s2290_s23, %s2290_s23 }
 0x999   :  { %v2407_v37 = vmul.f32 -1.442695, %v1851_v42  ;;  %v2408_v55 = vmul.f32 -1.442695, %v1853_v54  ;;  %p2935_p6 = scmp.ne.s32.totalorder %s2290_s23, %s2934_s25  ;;  %p2940_p8 = scmp.lt.s32.totalorder %s2934_s25, %s2934_s25 }
 0x99a   :  { %2754 = vpow2.f32 %v2406_v52 }
 0x99b   :  { %2756 = vpow2.f32 %v2407_v37  ;;  %p2941_p9 = por %p2940_p8, %p2939_p7 }
 0x99c   :  { %2758 = vpow2.f32 %v2408_v55 }
 0x99d   :  { %2760 = vtanh.f32 %v1852_v56  ;;  %p2942_p10 = pnand %p2941_p9, %p2935_p6 }
 0x9a4   :  { %v2755_v58 = vpop.eup %2754 }
 0x9a5   :  { %v2757_v59 = vpop.eup %2756  ;;  %v1857_v5 = vadd.f32 1.0, %v2755_v58 }
 0x9a6   :  { %v1863_v60 = vadd.f32 1.0, %v2757_v59  ;;  %v2759_v48 = vpop.eup %2758 }
 0x9a7   :  { %2762 = vrcp.f32 %v1857_v5  ;;  %v2761_v61 = vpop.eup %2760  ;;  %v1870_v47 = vadd.f32 1.0, %v2759_v48 }
 0x9a8   :  { %2764 = vrcp.f32 %v1863_v60 }
 0x9a9   :  { %2766 = vrcp.f32 %v1870_v47 }
 0x9b1   :  { %v2763_v63 = vpop.eup %2762 }
 0x9b2   :  { %v2765_v12 = vpop.eup %2764  ;;  %v1874_v13 = vmul.f32 %v2763_v63, %v2761_v61 }
 0x9b3   :  { %v1873_v14 = vmul.f32 %v2765_v12, %v3756_v51  ;;  %v2140_v36 = vpop.f32.mrb[52].mxu1  ;;  %v2213_v15 = vpop.f32.mrb[56].mxu0 }
 0x9b4   :  { %v2141_v41 = vadd.f32 %v2140_v36, %v3802_v38  ;;  %v2214_v18 = vadd.f32 %v2213_v15, %v3806_v20  ;;  %v2142_v16 = vpop.f32.mrb[53].mxu1  ;;  %v2215_v17 = vpop.f32.mrb[57].mxu0 }
 0x9b5   :  { %v2143_v23 = vadd.f32 %v2142_v16, %v3810_v0  ;;  %v2216_v32 = vadd.f32 %v2215_v17, %v3814_v10  ;;  %v2144_v24 = vpop.f32.mrb[54].mxu1  ;;  %v2217_v34 = vpop.f32.mrb[58].mxu0  ;;  %v1875_v11 = vadd.f32 %v1874_v13, %v1873_v14 }
 0x9b6   :  { %2252 = vst [vmem:[#allocation15] sm:$0xff] %v2141_v41  ;;  %2254 = vst [vmem:[#allocation15 + $0x10] sm:$0xff] %v2214_v18  ;;  %v2145_v51 = vadd.f32 %v2144_v24, %v3802_v38  ;;  %v2218_v31 = vadd.f32 %v2217_v34, %v3806_v20  ;;  %v2146_v22 = vpop.f32.mrb[55].mxu1  ;;  %v2219_v19 = vpop.f32.mrb[59].mxu0 }
 0x9b7   :  { %2253 = vst [vmem:[#allocation15 + $0x8] sm:$0xff] %v2143_v23  ;;  %2255 = vst [vmem:[#allocation15 + $0x18] sm:$0xff] %v2216_v32  ;;  %v2147_v35 = vadd.f32 %v2146_v22, %v3810_v0  ;;  %v2220_v30 = vadd.f32 %v2219_v19, %v3814_v10  ;;  %2768 = vtanh.f32 %v1875_v11  ;;  %v2767_v3 = vpop.eup %2766 }
 0x9b8   :  { %2256 = vst [vmem:[#allocation15 + $0x20] sm:$0xff] %v2145_v51  ;;  %2258 = vst [vmem:[#allocation15 + $0x30] sm:$0xff] %v2218_v31 }
 0x9b9   :  { %2257 = vst [vmem:[#allocation15 + $0x28] sm:$0xff] %v2147_v35  ;;  %2259 = vst [vmem:[#allocation15 + $0x38] sm:$0xff] %v2220_v30 }
 0x9bb   :  { %v2150_v26 = vpop.f32.mrb[56].mxu1  ;;  %v2223_v28 = vpop.f32.mrb[60].mxu0 }
 0x9bc   :  { %v2151_v29 = vadd.f32 %v2150_v26, %v3802_v38  ;;  %v2224_v57 = vadd.f32 %v2223_v28, %v3806_v20  ;;  %v2152_v43 = vpop.f32.mrb[57].mxu1  ;;  %v2225_v2 = vpop.f32.mrb[61].mxu0 }
 0x9bd   :  { %v2153_v27 = vadd.f32 %v2152_v43, %v3810_v0  ;;  %v2226_v1 = vadd.f32 %v2225_v2, %v3814_v10  ;;  %v2154_v39 = vpop.f32.mrb[58].mxu1  ;;  %v2227_v33 = vpop.f32.mrb[62].mxu0 }
 0x9be   :  { %2260 = vst [vmem:[#allocation15 + $0x40] sm:$0xff] %v2151_v29  ;;  %2262 = vst [vmem:[#allocation15 + $0x50] sm:$0xff] %v2224_v57  ;;  %v2155_v49 = vadd.f32 %v2154_v39, %v3802_v38  ;;  %v2228_v8 = vadd.f32 %v2227_v33, %v3806_v20  ;;  %v2156_v44 = vpop.f32.mrb[59].mxu1  ;;  %v2229_v45 = vpop.f32.mrb[63].mxu0 }
 0x9bf   :  { %2261 = vst [vmem:[#allocation15 + $0x48] sm:$0xff] %v2153_v27  ;;  %2263 = vst [vmem:[#allocation15 + $0x58] sm:$0xff] %v2226_v1  ;;  %v2157_v40 = vadd.f32 %v2156_v44, %v3810_v0  ;;  %v2230_v50 = vadd.f32 %v2229_v45, %v3814_v10 }
 0x9c0   :  { %2264 = vst [vmem:[#allocation15 + $0x60] sm:$0xff] %v2155_v49  ;;  %2266 = vst [vmem:[#allocation15 + $0x70] sm:$0xff] %v2228_v8 }
 0x9c1   :  { %v2769_v4 = vpop.eup %2768  ;;  %2265 = vst [vmem:[#allocation15 + $0x68] sm:$0xff] %v2157_v40  ;;  %2267 = vst [vmem:[#allocation15 + $0x78] sm:$0xff] %v2230_v50 }
 0x9c2   :  { %v1877_v6 = vmul.f32 %v2769_v4, %v2767_v3 }
 0x9c3   :  { %v2160_v7 = vpop.f32.mrb[60].mxu1  ;;  %v2233_v9 = vpop.f32.mrb[64].mxu0 }
 0x9c4   :  { %v2161_v42 = vadd.f32 %v2160_v7, %v3802_v38  ;;  %v2234_v52 = vadd.f32 %v2233_v9, %v3806_v20  ;;  %v2162_v37 = vpop.f32.mrb[61].mxu1  ;;  %v2235_v54 = vpop.f32.mrb[65].mxu0  ;;  %v1891_v55 = vpack.c.bf16 %v1877_v6, %v3759_v53 }
 0x9c5   :  { %v2163_v56 = vadd.f32 %v2162_v37, %v3810_v0  ;;  %v2236_v58 = vadd.f32 %v2235_v54, %v3814_v10  ;;  %v2164_v59 = vpop.f32.mrb[62].mxu1  ;;  %v2237_v5 = vpop.f32.mrb[66].mxu0 }
 0x9c6   :  { %2268 = vst [vmem:[#allocation15 + $0x80] sm:$0xff] %v2161_v42  ;;  %2270 = vst [vmem:[#allocation15 + $0x90] sm:$0xff] %v2234_v52  ;;  %v2165_v60 = vadd.f32 %v2164_v59, %v3802_v38  ;;  %v2238_v25 = vadd.f32 %v2237_v5, %v3806_v20  ;;  %v2166_v48 = vpop.f32.mrb[63].mxu1  ;;  %v2239_v61 = vpop.f32.mrb[67].mxu0  ;;  %2169 = vmatmul.mubr.bf16.gmra.mrb[64].mxu1 %v1891_v55 }
 0x9c7   :  { %2269 = vst [vmem:[#allocation15 + $0x88] sm:$0xff] %v2163_v56  ;;  %2271 = vst [vmem:[#allocation15 + $0x98] sm:$0xff] %v2236_v58  ;;  %v2167_v62 = vadd.f32 %v2166_v48, %v3810_v0  ;;  %v2240_v53 = vadd.f32 %v2239_v61, %v3814_v10  ;;  %2241 = vmatprep.mubr.bf16.mxu1 %v3899_v21 }
 0x9c8   :  { %2272 = vst [vmem:[#allocation15 + $0xa0] sm:$0xff] %v2165_v60  ;;  %2274 = vst [vmem:[#allocation15 + $0xb0] sm:$0xff] %v2238_v25 }
 0x9c9   :  { %2273 = vst [vmem:[#allocation15 + $0xa8] sm:$0xff] %v2167_v62  ;;  %2275 = vst [vmem:[#allocation15 + $0xb8] sm:$0xff] %v2240_v53 }
 0x9ce   :  { %2242 = vmatmul.mubr.bf16.vlgmr.msra.gmra.mrb[68].mxu1 %v1891_v55 }
 0xa99   :  { %v2170_v63 = vpop.f32.mrb[64].mxu1 }
 0xa9a   :  { %v2171_v46 = vadd.f32 %v2170_v63, %v3802_v38  ;;  %v2172_v12 = vpop.f32.mrb[65].mxu1 }
 0xa9b   :  { %v2173_v13 = vadd.f32 %v2172_v12, %v3810_v0  ;;  %v2174_v47 = vpop.f32.mrb[66].mxu1 }
 0xa9c   :  { %2276 = vst [vmem:[#allocation15 + $0xc0] sm:$0xff] %v2171_v46  ;;  %v2175_v14 = vadd.f32 %v2174_v47, %v3802_v38  ;;  %v2176_v36 = vpop.f32.mrb[67].mxu1 }
 0xa9d   :  { %2277 = vst [vmem:[#allocation15 + $0xc8] sm:$0xff] %v2173_v13  ;;  %v2177_v15 = vadd.f32 %v2176_v36, %v3810_v0 }
 0xa9e   :  { %2280 = vst [vmem:[#allocation15 + $0xe0] sm:$0xff] %v2175_v14 }
 0xa9f   :  { %2281 = vst [vmem:[#allocation15 + $0xe8] sm:$0xff] %v2177_v15 }
 0xaa1   :  { %v2243_v21 = vpop.f32.mrb[68].mxu1 }
 0xaa2   :  { %v2244_v41 = vadd.f32 %v2243_v21, %v3806_v20  ;;  %v2245_v18 = vpop.f32.mrb[69].mxu1 }
 0xaa3   :  { %v2246_v16 = vadd.f32 %v2245_v18, %v3814_v10  ;;  %v2247_v17 = vpop.f32.mrb[70].mxu1 }
 0xaa4   :  { %2278 = vst [vmem:[#allocation15 + $0xd0] sm:$0xff] %v2244_v41  ;;  %v2248_v23 = vadd.f32 %v2247_v17, %v3806_v20  ;;  %v2249_v32 = vpop.f32.mrb[71].mxu1 }
 0xaa5   :  { %2279 = vst [vmem:[#allocation15 + $0xd8] sm:$0xff] %v2246_v16  ;;  %v2250_v38 = vadd.f32 %v2249_v32, %v3814_v10 }
 0xaa6   :  { %2282 = vst [vmem:[#allocation15 + $0xf0] sm:$0xff] %v2248_v23 }
 0xaa7   :  { %2283 = vst [vmem:[#allocation15 + $0xf8] sm:$0xff] %v2250_v38 }
 0xaa8   :  { %2945 = shalt.err (!%p2942_p10)
}
 0xaa9   :  { %s2946_s28 = scalar_lea.hbm %s3872_s9, 4096 }
 0xaaa   :  { %p2947_p11 = scmp.ne.s32.totalorder %s3872_s9, %s2946_s28  ;;  %p2950_p12 = scmp.lt.u32.totalorder %s2946_s28, %s3872_s9 }
 0xaac   :  { %p2952_p13 = pnand %p2950_p12, %p2947_p11 }
 0xaae   :  { %2955 = shalt.err (!%p2952_p13)
}
 0xaaf   :  { %s2980_s11 = smov 512   ;;  %s2981_s2 = smov 32  }
 0xab0   :  { %2295 = dma.vmem_to_hbm [thread:$0]  %s2290_s23, 4096, %s3872_s9, [#allocation6], %s2980_s11, %s2980_s11, %s2981_s2  }
 0xab1   :  { %2964 = dma.done.wait [#allocation6], 4096  }
 0xab2   :  { %2965 = vsyncadd [#allocation6], 4294963200 }
 0xab3   :  { %2299 = vsyncpa [#allocation5], 1 }
 0xab4   :  { %2300 = vsyncpa [#allocation8], 1 }
 0xab5   :  { %2301 = vsyncpa [#allocation11], 1 }
 0xab6   :  { %2302 = vsyncpa [#allocation14], 1 }
 0xab7   :  { %2303 = vsyncpa [#allocation6], 1 }

</bundles_post_ra>
